<compile_context>
chip_gen: v7x
topology: tpu7x:2x2x1
jax: 0.10.0
libtpu: 0.0.40
codegen_flags: <defaults>
</compile_context>

<pallas_src>
import jax
import jax.numpy as jnp
from jax.experimental import pallas as pl
from jax.experimental.pallas import tpu as pltpu

# ---- small, deterministic TabNet hyper-parameters --------------------------
B = 16             # total batch (demo)
BT = 8             # batch block per grid step (multiple of 8)
F = 16             # input_dim (tabular feature count)
ND = 8             # n_d
NA = 8             # n_a
NDNA = ND + NA     # width of feature-transformer output
NSTEPS = 2         # n_steps
OUT_DIM = 4        # output_dim
OUT_PAD = 128      # lane-dense padded output width
NTRANS = NSTEPS + 1  # initial splitter + one feature transformer per step
GAMMA_RELAX = 1.3
BN_EPS = 1e-5
SQRT_HALF = 0.5 ** 0.5


# ---- math shared by kernel and reference ------------------------------------
def _sigmoid(v):
    return 1.0 / (1.0 + jnp.exp(-v))


def _sparsemax(z):
    # Exact sparsemax over the last axis, sort-free O(F^2) formulation
    # (compares, broadcasts and reductions only — no sort on TPU).
    zc = z[:, :, None]                          # (B, F, 1) candidates z_i
    za = z[:, None, :]                          # (B, 1, F)
    ge = (za >= zc).astype(jnp.float32)         # (B, F, F): [i, j] = z_j >= z_i
    k = jnp.sum(ge, axis=-1)                    # (B, F)  #elements >= z_i
    cs = jnp.sum(ge * za, axis=-1)              # (B, F)  sum of elements >= z_i
    support = ((1.0 + k * z) > cs).astype(jnp.float32)
    ssum = jnp.sum(support * z, axis=-1, keepdims=True)
    scnt = jnp.sum(support, axis=-1, keepdims=True)
    tau = (ssum - 1.0) / scnt
    return jnp.maximum(z - tau, 0.0)


# ---- Pallas kernel (BN-folded, slice-free, lane-dense output) ----------------
def _tabnet_kernel(x_ref, s0_ref, b0_ref,
                   wv_sh_ref, wg_sh_ref, bv_sh_ref, bg_sh_ref,
                   wv_ind_ref, wg_ind_ref, bv_ind_ref, bg_ind_ref,
                   w_att_ref, b_att_ref, w_fin_ref, out_ref):
    xb = x_ref[...] * s0_ref[...] + b0_ref[...]          # initial BN (eval mode)

    def glu(h, wv, wg, bv, bg):
        v = jnp.dot(h, wv, preferred_element_type=jnp.float32) + bv
        g = jnp.dot(h, wg, preferred_element_type=jnp.float32) + bg
        return v * _sigmoid(g)

    def feat_transformer(t, h):
        g = glu(h, wv_sh_ref[t], wg_sh_ref[t], bv_sh_ref[t], bg_sh_ref[t])
        r = glu(g, wv_ind_ref[t], wg_ind_ref[t], bv_ind_ref[t], bg_ind_ref[t])
        return (g + r) * SQRT_HALF

    o = feat_transformer(0, xb)                           # initial splitter
    prior = jnp.ones_like(xb)                             # (BT, F)
    res = jnp.zeros((xb.shape[0], NDNA), jnp.float32)

    # m_loss / entropy path intentionally not computed: NetworkWrapper drops it.
    for step in range(NSTEPS):
        # attentive transformer: w_att has its first ND K-rows zeroed, so this
        # equals o[:, ND:] @ W_att without any lane slice.
        a = jnp.dot(o, w_att_ref[step],
                    preferred_element_type=jnp.float32) + b_att_ref[step]
        m = _sparsemax(a * prior)
        prior = (GAMMA_RELAX - m) * prior
        o = feat_transformer(step + 1, m * xb)
        res = res + jnp.maximum(o, 0.0)                   # NA cols killed by w_fin pad

    # final mapping: (NDNA, 128) weight, rows ND.. and cols OUT_DIM.. are zero
    out_ref[...] = jnp.dot(res, w_fin_ref[...],
                           preferred_element_type=jnp.float32)


def _full_spec(a):
    nd = a.ndim
    return pl.BlockSpec(a.shape, lambda i, nd=nd: (0,) * nd)


@jax.jit
def network_wrapper_forward(x, folded):
    batch = x.shape[0]
    in_specs = [pl.BlockSpec((BT, F), lambda i: (i, 0))]
    in_specs += [_full_spec(p) for p in folded]
    out = pl.pallas_call(
        _tabnet_kernel,
        out_shape=jax.ShapeDtypeStruct((batch, OUT_PAD), jnp.float32),
        grid=(batch // BT,),
        in_specs=in_specs,
        out_specs=pl.BlockSpec((BT, OUT_PAD), lambda i: (i, 0)),
        compiler_params=pltpu.CompilerParams(
            dimension_semantics=("parallel",)),
    )(x, *folded)
    # NetworkWrapper.forward: x = self.network(x); x = x[0]  (m_loss discarded)
    return out[:, :OUT_DIM]


# ---- deterministic raw parameters (pytorch_tabnet-style layout) --------------
def init_params(key):
    k = jax.random.split(key, 8)

    def w(kk, shape):
        fan_in = shape[-2]
        return (jax.random.normal(kk, shape, jnp.float32)
                / jnp.sqrt(jnp.float32(fan_in))).astype(jnp.float32)

    def bn(kk, n, c):
        kg, kb = jax.random.split(kk)
        g = 1.0 + 0.1 * jax.random.normal(kg, (n, c), jnp.float32)
        b = 0.05 * jax.random.normal(kb, (n, c), jnp.float32)
        return jnp.stack([g, b], axis=1)        # (n, 2, c)

    init_bn = bn(k[0], 1, F)[0]                 # (2, F)
    w_sh = w(k[1], (F, 2 * NDNA))               # shared GLU FC (weight shared)
    bn_sh = bn(k[2], NTRANS, 2 * NDNA)          # per-transformer BN of shared GLU
    w_ind = w(k[3], (NTRANS, NDNA, 2 * NDNA))   # independent GLU FC per transformer
    bn_ind = bn(k[4], NTRANS, 2 * NDNA)
    w_att = w(k[5], (NSTEPS, NA, F))            # attentive transformer FC per step
    bn_att = bn(k[6], NSTEPS, F)
    w_fin = w(k[7], (ND, OUT_DIM))              # final mapping (no bias)
    return (init_bn, w_sh, bn_sh, w_ind, bn_ind, w_att, bn_att, w_fin)


# ---- host-side, one-time: fold eval-mode BNs into FC weights, pad for lanes --
def fold_params(raw):
    init_bn, w_sh, bn_sh, w_ind, bn_ind, w_att, bn_att, w_fin = raw
    inv = jnp.float32(1.0 / (1.0 + BN_EPS) ** 0.5)

    s0 = (init_bn[0] * inv)[None, :]                       # (1, F)
    b0 = init_bn[1][None, :]                               # (1, F)

    # shared GLU: FC weight shared, BN per transformer -> per-transformer copies
    sc_sh = bn_sh[:, 0, :] * inv                           # (NTRANS, 2*NDNA)
    be_sh = bn_sh[:, 1, :]
    wf_sh = w_sh[None, :, :] * sc_sh[:, None, :]           # (NTRANS, F, 2*NDNA)
    wv_sh, wg_sh = wf_sh[..., :NDNA], wf_sh[..., NDNA:]
    bv_sh = be_sh[:, None, :NDNA]                          # (NTRANS, 1, NDNA)
    bg_sh = be_sh[:, None, NDNA:]

    sc_ind = bn_ind[:, 0, :] * inv
    be_ind = bn_ind[:, 1, :]
    wf_ind = w_ind * sc_ind[:, None, :]                    # (NTRANS, NDNA, 2*NDNA)
    wv_ind, wg_ind = wf_ind[..., :NDNA], wf_ind[..., NDNA:]
    bv_ind = be_ind[:, None, :NDNA]
    bg_ind = be_ind[:, None, NDNA:]

    # attentive transformer: fold BN, zero-pad the d-rows so the kernel can
    # feed the full (BT, NDNA) transformer output without slicing.
    sc_att = bn_att[:, 0, :] * inv                         # (NSTEPS, F)
    wf_att = w_att * sc_att[:, None, :]                    # (NSTEPS, NA, F)
    w_att_p = jnp.concatenate(
        [jnp.zeros((NSTEPS, ND, F), jnp.float32), wf_att], axis=1)  # (NSTEPS, NDNA, F)
    b_att = bn_att[:, 1, :][:, None, :]                    # (NSTEPS, 1, F)

    # final mapping: zero-pad to (NDNA, 128) -> lane-dense output store
    w_fin_p = jnp.zeros((NDNA, OUT_PAD), jnp.float32).at[:ND, :OUT_DIM].set(w_fin)

    return (s0, b0, wv_sh, wg_sh, bv_sh, bg_sh,
            wv_ind, wg_ind, bv_ind, bg_ind, w_att_p, b_att, w_fin_p)


# ---- pure-JAX reference with the ORIGINAL (unfolded) TabNet math -------------
def _tabnet_reference(x, raw):
    init_bn, w_sh, bn_sh, w_ind, bn_ind, w_att, bn_att, w_fin = raw

    def bn_eval(h, g, b):
        return h * (g / jnp.sqrt(1.0 + BN_EPS)) + b

    def glu_layer(h, w, g, b):
        z = bn_eval(jnp.dot(h, w, preferred_element_type=jnp.float32), g, b)
        return z[:, :NDNA] * _sigmoid(z[:, NDNA:])

    def feat(t, h):
        g = glu_layer(h, w_sh, bn_sh[t, 0][None, :], bn_sh[t, 1][None, :])
        r = glu_layer(g, w_ind[t], bn_ind[t, 0][None, :], bn_ind[t, 1][None, :])
        return (g + r) * SQRT_HALF

    xb = bn_eval(x, init_bn[0][None, :], init_bn[1][None, :])
    att = feat(0, xb)[:, ND:]
    prior = jnp.ones_like(xb)
    res = jnp.zeros((x.shape[0], ND), jnp.float32)
    for step in range(NSTEPS):
        a = bn_eval(jnp.dot(att, w_att[step], preferred_element_type=jnp.float32),
                    bn_att[step, 0][None, :], bn_att[step, 1][None, :])
        m = _sparsemax(a * prior)
        prior = (GAMMA_RELAX - m) * prior
        o = feat(step + 1, m * xb)
        res = res + jnp.maximum(o[:, :ND], 0.0)
        att = o[:, ND:]
    return jnp.dot(res, w_fin, preferred_element_type=jnp.float32)


if __name__ == "__main__":
    key = jax.random.PRNGKey(0)
    kx, kp = jax.random.split(key)
    x = jax.random.normal(kx, (B, F), jnp.float32)
    raw = init_params(kp)
    folded = fold_params(raw)          # host-side, once

    out = network_wrapper_forward(x, folded)
    out = jax.block_until_ready(out)

    ref_out = _tabnet_reference(x, raw)
    assert out.shape == (B, OUT_DIM)
    if not bool(jnp.allclose(out, ref_out, rtol=2e-2, atol=2e-2)):
        raise SystemExit("Pallas kernel output mismatch vs reference")
    print("KERNEL_OK")
</pallas_src>

<mosaic_0001>
module attributes {stable_mosaic.version = 11 : i64} {
  func.func @_tabnet_kernel(%arg0: i32, %arg1: memref<8x16xf32, #tpu.memory_space<vmem>>, %arg2: memref<1x16xf32, #tpu.memory_space<vmem>>, %arg3: memref<1x16xf32, #tpu.memory_space<vmem>>, %arg4: memref<3x16x16xf32, #tpu.memory_space<vmem>>, %arg5: memref<3x16x16xf32, #tpu.memory_space<vmem>>, %arg6: memref<3x1x16xf32, #tpu.memory_space<vmem>>, %arg7: memref<3x1x16xf32, #tpu.memory_space<vmem>>, %arg8: memref<3x16x16xf32, #tpu.memory_space<vmem>>, %arg9: memref<3x16x16xf32, #tpu.memory_space<vmem>>, %arg10: memref<3x1x16xf32, #tpu.memory_space<vmem>>, %arg11: memref<3x1x16xf32, #tpu.memory_space<vmem>>, %arg12: memref<2x16x16xf32, #tpu.memory_space<vmem>>, %arg13: memref<2x1x16xf32, #tpu.memory_space<vmem>>, %arg14: memref<16x128xf32, #tpu.memory_space<vmem>>, %arg15: memref<8x128xf32, #tpu.memory_space<vmem>>) attributes {dimension_semantics = [#tpu.dimension_semantics<parallel>], iteration_bounds = array<i64: 2>, scalar_prefetch = 0 : i64, scratch_operands = 0 : i64, tpu.core_type = #tpu.core_type<tc>, window_params = [{transform_indices = @transform_0, window_bounds = array<i64: 8, 16>}, {pipeline_mode = #tpu.pipeline_mode<synchronous>, transform_indices = @transform_1, window_bounds = array<i64: 1, 16>}, {pipeline_mode = #tpu.pipeline_mode<synchronous>, transform_indices = @transform_2, window_bounds = array<i64: 1, 16>}, {pipeline_mode = #tpu.pipeline_mode<synchronous>, transform_indices = @transform_3, window_bounds = array<i64: 3, 16, 16>}, {pipeline_mode = #tpu.pipeline_mode<synchronous>, transform_indices = @transform_4, window_bounds = array<i64: 3, 16, 16>}, {pipeline_mode = #tpu.pipeline_mode<synchronous>, transform_indices = @transform_5, window_bounds = array<i64: 3, 1, 16>}, {pipeline_mode = #tpu.pipeline_mode<synchronous>, transform_indices = @transform_6, window_bounds = array<i64: 3, 1, 16>}, {pipeline_mode = #tpu.pipeline_mode<synchronous>, transform_indices = @transform_7, window_bounds = array<i64: 3, 16, 16>}, {pipeline_mode = #tpu.pipeline_mode<synchronous>, transform_indices = @transform_8, window_bounds = array<i64: 3, 16, 16>}, {pipeline_mode = #tpu.pipeline_mode<synchronous>, transform_indices = @transform_9, window_bounds = array<i64: 3, 1, 16>}, {pipeline_mode = #tpu.pipeline_mode<synchronous>, transform_indices = @transform_10, window_bounds = array<i64: 3, 1, 16>}, {pipeline_mode = #tpu.pipeline_mode<synchronous>, transform_indices = @transform_11, window_bounds = array<i64: 2, 16, 16>}, {pipeline_mode = #tpu.pipeline_mode<synchronous>, transform_indices = @transform_12, window_bounds = array<i64: 2, 1, 16>}, {pipeline_mode = #tpu.pipeline_mode<synchronous>, transform_indices = @transform_13, window_bounds = array<i64: 16, 128>}, {transform_indices = @transform_14, window_bounds = array<i64: 8, 128>}]} {
    %c0 = arith.constant 0 : index
    %c0_0 = arith.constant 0 : index
    %0 = vector.load %arg1[%c0, %c0_0] : memref<8x16xf32, #tpu.memory_space<vmem>>, vector<8x16xf32>
    %c0_1 = arith.constant 0 : index
    %c0_2 = arith.constant 0 : index
    %1 = vector.load %arg2[%c0_1, %c0_2] : memref<1x16xf32, #tpu.memory_space<vmem>>, vector<1x16xf32>
    %2 = vector.broadcast %1 : vector<1x16xf32> to vector<8x16xf32>
    %3 = arith.mulf %0, %2 : vector<8x16xf32>
    %c0_3 = arith.constant 0 : index
    %c0_4 = arith.constant 0 : index
    %4 = vector.load %arg3[%c0_3, %c0_4] : memref<1x16xf32, #tpu.memory_space<vmem>>, vector<1x16xf32>
    %5 = vector.broadcast %4 : vector<1x16xf32> to vector<8x16xf32>
    %6 = arith.addf %3, %5 : vector<8x16xf32>
    %c0_5 = arith.constant 0 : index
    %c0_6 = arith.constant 0 : index
    %c0_7 = arith.constant 0 : index
    %7 = vector.load %arg4[%c0_5, %c0_6, %c0_7] : memref<3x16x16xf32, #tpu.memory_space<vmem>>, vector<1x16x16xf32>
    %8 = vector.shape_cast %7 : vector<1x16x16xf32> to vector<16x16xf32>
    %c0_8 = arith.constant 0 : index
    %c0_9 = arith.constant 0 : index
    %c0_10 = arith.constant 0 : index
    %9 = vector.load %arg5[%c0_8, %c0_9, %c0_10] : memref<3x16x16xf32, #tpu.memory_space<vmem>>, vector<1x16x16xf32>
    %10 = vector.shape_cast %9 : vector<1x16x16xf32> to vector<16x16xf32>
    %c0_11 = arith.constant 0 : index
    %c0_12 = arith.constant 0 : index
    %c0_13 = arith.constant 0 : index
    %11 = vector.load %arg6[%c0_11, %c0_12, %c0_13] : memref<3x1x16xf32, #tpu.memory_space<vmem>>, vector<1x1x16xf32>
    %12 = vector.shape_cast %11 : vector<1x1x16xf32> to vector<1x16xf32>
    %c0_14 = arith.constant 0 : index
    %c0_15 = arith.constant 0 : index
    %c0_16 = arith.constant 0 : index
    %13 = vector.load %arg7[%c0_14, %c0_15, %c0_16] : memref<3x1x16xf32, #tpu.memory_space<vmem>>, vector<1x1x16xf32>
    %14 = vector.shape_cast %13 : vector<1x1x16xf32> to vector<1x16xf32>
    %cst = arith.constant dense<0.000000e+00> : vector<8x16xf32>
    %15 = tpu.matmul %6, %8, %cst {dimension_numbers = #tpu.dot_dimension_numbers<[1], [0], [0], [1], [0, 0, 1, 1], [], []>} : vector<8x16xf32>, vector<16x16xf32>, vector<8x16xf32> -> vector<8x16xf32>
    %16 = vector.broadcast %12 : vector<1x16xf32> to vector<8x16xf32>
    %17 = arith.addf %15, %16 : vector<8x16xf32>
    %cst_17 = arith.constant dense<0.000000e+00> : vector<8x16xf32>
    %18 = tpu.matmul %6, %10, %cst_17 {dimension_numbers = #tpu.dot_dimension_numbers<[1], [0], [0], [1], [0, 0, 1, 1], [], []>} : vector<8x16xf32>, vector<16x16xf32>, vector<8x16xf32> -> vector<8x16xf32>
    %19 = vector.broadcast %14 : vector<1x16xf32> to vector<8x16xf32>
    %20 = arith.addf %18, %19 : vector<8x16xf32>
    %cst_18 = arith.constant 0.000000e+00 : f32
    %21 = vector.broadcast %cst_18 : f32 to vector<8x16xf32>
    %22 = arith.subf %21, %20 : vector<8x16xf32>
    %23 = math.exp %22 : vector<8x16xf32>
    %cst_19 = arith.constant 1.000000e+00 : f32
    %24 = vector.broadcast %cst_19 : f32 to vector<8x16xf32>
    %25 = arith.addf %24, %23 : vector<8x16xf32>
    %cst_20 = arith.constant 1.000000e+00 : f32
    %26 = vector.broadcast %cst_20 : f32 to vector<8x16xf32>
    %27 = arith.divf %26, %25 : vector<8x16xf32>
    %28 = arith.mulf %17, %27 : vector<8x16xf32>
    %c0_21 = arith.constant 0 : index
    %c0_22 = arith.constant 0 : index
    %c0_23 = arith.constant 0 : index
    %29 = vector.load %arg8[%c0_21, %c0_22, %c0_23] : memref<3x16x16xf32, #tpu.memory_space<vmem>>, vector<1x16x16xf32>
    %30 = vector.shape_cast %29 : vector<1x16x16xf32> to vector<16x16xf32>
    %c0_24 = arith.constant 0 : index
    %c0_25 = arith.constant 0 : index
    %c0_26 = arith.constant 0 : index
    %31 = vector.load %arg9[%c0_24, %c0_25, %c0_26] : memref<3x16x16xf32, #tpu.memory_space<vmem>>, vector<1x16x16xf32>
    %32 = vector.shape_cast %31 : vector<1x16x16xf32> to vector<16x16xf32>
    %c0_27 = arith.constant 0 : index
    %c0_28 = arith.constant 0 : index
    %c0_29 = arith.constant 0 : index
    %33 = vector.load %arg10[%c0_27, %c0_28, %c0_29] : memref<3x1x16xf32, #tpu.memory_space<vmem>>, vector<1x1x16xf32>
    %34 = vector.shape_cast %33 : vector<1x1x16xf32> to vector<1x16xf32>
    %c0_30 = arith.constant 0 : index
    %c0_31 = arith.constant 0 : index
    %c0_32 = arith.constant 0 : index
    %35 = vector.load %arg11[%c0_30, %c0_31, %c0_32] : memref<3x1x16xf32, #tpu.memory_space<vmem>>, vector<1x1x16xf32>
    %36 = vector.shape_cast %35 : vector<1x1x16xf32> to vector<1x16xf32>
    %cst_33 = arith.constant dense<0.000000e+00> : vector<8x16xf32>
    %37 = tpu.matmul %28, %30, %cst_33 {dimension_numbers = #tpu.dot_dimension_numbers<[1], [0], [0], [1], [0, 0, 1, 1], [], []>} : vector<8x16xf32>, vector<16x16xf32>, vector<8x16xf32> -> vector<8x16xf32>
    %38 = vector.broadcast %34 : vector<1x16xf32> to vector<8x16xf32>
    %39 = arith.addf %37, %38 : vector<8x16xf32>
    %cst_34 = arith.constant dense<0.000000e+00> : vector<8x16xf32>
    %40 = tpu.matmul %28, %32, %cst_34 {dimension_numbers = #tpu.dot_dimension_numbers<[1], [0], [0], [1], [0, 0, 1, 1], [], []>} : vector<8x16xf32>, vector<16x16xf32>, vector<8x16xf32> -> vector<8x16xf32>
    %41 = vector.broadcast %36 : vector<1x16xf32> to vector<8x16xf32>
    %42 = arith.addf %40, %41 : vector<8x16xf32>
    %cst_35 = arith.constant 0.000000e+00 : f32
    %43 = vector.broadcast %cst_35 : f32 to vector<8x16xf32>
    %44 = arith.subf %43, %42 : vector<8x16xf32>
    %45 = math.exp %44 : vector<8x16xf32>
    %cst_36 = arith.constant 1.000000e+00 : f32
    %46 = vector.broadcast %cst_36 : f32 to vector<8x16xf32>
    %47 = arith.addf %46, %45 : vector<8x16xf32>
    %cst_37 = arith.constant 1.000000e+00 : f32
    %48 = vector.broadcast %cst_37 : f32 to vector<8x16xf32>
    %49 = arith.divf %48, %47 : vector<8x16xf32>
    %50 = arith.mulf %39, %49 : vector<8x16xf32>
    %51 = arith.addf %28, %50 : vector<8x16xf32>
    %cst_38 = arith.constant 0.707106769 : f32
    %52 = vector.broadcast %cst_38 : f32 to vector<8x16xf32>
    %53 = arith.mulf %51, %52 : vector<8x16xf32>
    %cst_39 = arith.constant 1.000000e+00 : f32
    %54 = vector.broadcast %cst_39 : f32 to vector<8x16xf32>
    %cst_40 = arith.constant 0.000000e+00 : f32
    %55 = vector.broadcast %cst_40 : f32 to vector<8x16xf32>
    %c0_41 = arith.constant 0 : index
    %c0_42 = arith.constant 0 : index
    %c0_43 = arith.constant 0 : index
    %56 = vector.load %arg12[%c0_41, %c0_42, %c0_43] : memref<2x16x16xf32, #tpu.memory_space<vmem>>, vector<1x16x16xf32>
    %57 = vector.shape_cast %56 : vector<1x16x16xf32> to vector<16x16xf32>
    %cst_44 = arith.constant dense<0.000000e+00> : vector<8x16xf32>
    %58 = tpu.matmul %53, %57, %cst_44 {dimension_numbers = #tpu.dot_dimension_numbers<[1], [0], [0], [1], [0, 0, 1, 1], [], []>} : vector<8x16xf32>, vector<16x16xf32>, vector<8x16xf32> -> vector<8x16xf32>
    %c0_45 = arith.constant 0 : index
    %c0_46 = arith.constant 0 : index
    %c0_47 = arith.constant 0 : index
    %59 = vector.load %arg13[%c0_45, %c0_46, %c0_47] : memref<2x1x16xf32, #tpu.memory_space<vmem>>, vector<1x1x16xf32>
    %60 = vector.shape_cast %59 : vector<1x1x16xf32> to vector<1x16xf32>
    %61 = vector.broadcast %60 : vector<1x16xf32> to vector<8x16xf32>
    %62 = arith.addf %58, %61 : vector<8x16xf32>
    %63 = arith.mulf %62, %54 : vector<8x16xf32>
    %64 = vector.shape_cast %63 : vector<8x16xf32> to vector<8x16x1xf32>
    %65 = vector.shape_cast %63 : vector<8x16xf32> to vector<8x1x16xf32>
    %66 = vector.broadcast %65 : vector<8x1x16xf32> to vector<8x16x16xf32>
    %67 = vector.broadcast %64 : vector<8x16x1xf32> to vector<8x16x16xf32>
    %68 = arith.cmpf oge, %66, %67 : vector<8x16x16xf32>
    %69 = arith.extui %68 : vector<8x16x16xi1> to vector<8x16x16xi32>
    %70 = arith.sitofp %69 : vector<8x16x16xi32> to vector<8x16x16xf32>
    %cst_48 = arith.constant dense<0.000000e+00> : vector<8x16xf32>
    %71 = vector.multi_reduction <add>, %70, %cst_48 [2] : vector<8x16x16xf32> to vector<8x16xf32>
    %72 = vector.broadcast %65 : vector<8x1x16xf32> to vector<8x16x16xf32>
    %73 = arith.mulf %70, %72 : vector<8x16x16xf32>
    %cst_49 = arith.constant dense<0.000000e+00> : vector<8x16xf32>
    %74 = vector.multi_reduction <add>, %73, %cst_49 [2] : vector<8x16x16xf32> to vector<8x16xf32>
    %75 = arith.mulf %71, %63 : vector<8x16xf32>
    %cst_50 = arith.constant 1.000000e+00 : f32
    %76 = vector.broadcast %cst_50 : f32 to vector<8x16xf32>
    %77 = arith.addf %76, %75 : vector<8x16xf32>
    %78 = arith.cmpf ogt, %77, %74 : vector<8x16xf32>
    %79 = arith.extui %78 : vector<8x16xi1> to vector<8x16xi32>
    %80 = arith.sitofp %79 : vector<8x16xi32> to vector<8x16xf32>
    %81 = arith.mulf %80, %63 : vector<8x16xf32>
    %cst_51 = arith.constant dense<0.000000e+00> : vector<8xf32>
    %82 = vector.multi_reduction <add>, %81, %cst_51 [1] : vector<8x16xf32> to vector<8xf32>
    %83 = vector.shape_cast %82 : vector<8xf32> to vector<8x1xf32>
    %cst_52 = arith.constant dense<0.000000e+00> : vector<8xf32>
    %84 = vector.multi_reduction <add>, %80, %cst_52 [1] : vector<8x16xf32> to vector<8xf32>
    %85 = vector.shape_cast %84 : vector<8xf32> to vector<8x1xf32>
    %cst_53 = arith.constant 1.000000e+00 : f32
    %86 = vector.broadcast %cst_53 : f32 to vector<8x1xf32>
    %87 = arith.subf %83, %86 : vector<8x1xf32>
    %88 = arith.divf %87, %85 : vector<8x1xf32>
    %89 = vector.broadcast %88 : vector<8x1xf32> to vector<8x16xf32>
    %90 = arith.subf %63, %89 : vector<8x16xf32>
    %cst_54 = arith.constant 0.000000e+00 : f32
    %91 = vector.broadcast %cst_54 : f32 to vector<8x16xf32>
    %92 = arith.maximumf %90, %91 : vector<8x16xf32>
    %cst_55 = arith.constant 1.300000e+00 : f32
    %93 = vector.broadcast %cst_55 : f32 to vector<8x16xf32>
    %94 = arith.subf %93, %92 : vector<8x16xf32>
    %95 = arith.mulf %94, %54 : vector<8x16xf32>
    %96 = arith.mulf %92, %6 : vector<8x16xf32>
    %c1 = arith.constant 1 : index
    %c0_56 = arith.constant 0 : index
    %c0_57 = arith.constant 0 : index
    %97 = vector.load %arg4[%c1, %c0_56, %c0_57] : memref<3x16x16xf32, #tpu.memory_space<vmem>>, vector<1x16x16xf32>
    %98 = vector.shape_cast %97 : vector<1x16x16xf32> to vector<16x16xf32>
    %c1_58 = arith.constant 1 : index
    %c0_59 = arith.constant 0 : index
    %c0_60 = arith.constant 0 : index
    %99 = vector.load %arg5[%c1_58, %c0_59, %c0_60] : memref<3x16x16xf32, #tpu.memory_space<vmem>>, vector<1x16x16xf32>
    %100 = vector.shape_cast %99 : vector<1x16x16xf32> to vector<16x16xf32>
    %c1_61 = arith.constant 1 : index
    %c0_62 = arith.constant 0 : index
    %c0_63 = arith.constant 0 : index
    %101 = vector.load %arg6[%c1_61, %c0_62, %c0_63] : memref<3x1x16xf32, #tpu.memory_space<vmem>>, vector<1x1x16xf32>
    %102 = vector.shape_cast %101 : vector<1x1x16xf32> to vector<1x16xf32>
    %c1_64 = arith.constant 1 : index
    %c0_65 = arith.constant 0 : index
    %c0_66 = arith.constant 0 : index
    %103 = vector.load %arg7[%c1_64, %c0_65, %c0_66] : memref<3x1x16xf32, #tpu.memory_space<vmem>>, vector<1x1x16xf32>
    %104 = vector.shape_cast %103 : vector<1x1x16xf32> to vector<1x16xf32>
    %cst_67 = arith.constant dense<0.000000e+00> : vector<8x16xf32>
    %105 = tpu.matmul %96, %98, %cst_67 {dimension_numbers = #tpu.dot_dimension_numbers<[1], [0], [0], [1], [0, 0, 1, 1], [], []>} : vector<8x16xf32>, vector<16x16xf32>, vector<8x16xf32> -> vector<8x16xf32>
    %106 = vector.broadcast %102 : vector<1x16xf32> to vector<8x16xf32>
    %107 = arith.addf %105, %106 : vector<8x16xf32>
    %cst_68 = arith.constant dense<0.000000e+00> : vector<8x16xf32>
    %108 = tpu.matmul %96, %100, %cst_68 {dimension_numbers = #tpu.dot_dimension_numbers<[1], [0], [0], [1], [0, 0, 1, 1], [], []>} : vector<8x16xf32>, vector<16x16xf32>, vector<8x16xf32> -> vector<8x16xf32>
    %109 = vector.broadcast %104 : vector<1x16xf32> to vector<8x16xf32>
    %110 = arith.addf %108, %109 : vector<8x16xf32>
    %cst_69 = arith.constant 0.000000e+00 : f32
    %111 = vector.broadcast %cst_69 : f32 to vector<8x16xf32>
    %112 = arith.subf %111, %110 : vector<8x16xf32>
    %113 = math.exp %112 : vector<8x16xf32>
    %cst_70 = arith.constant 1.000000e+00 : f32
    %114 = vector.broadcast %cst_70 : f32 to vector<8x16xf32>
    %115 = arith.addf %114, %113 : vector<8x16xf32>
    %cst_71 = arith.constant 1.000000e+00 : f32
    %116 = vector.broadcast %cst_71 : f32 to vector<8x16xf32>
    %117 = arith.divf %116, %115 : vector<8x16xf32>
    %118 = arith.mulf %107, %117 : vector<8x16xf32>
    %c1_72 = arith.constant 1 : index
    %c0_73 = arith.constant 0 : index
    %c0_74 = arith.constant 0 : index
    %119 = vector.load %arg8[%c1_72, %c0_73, %c0_74] : memref<3x16x16xf32, #tpu.memory_space<vmem>>, vector<1x16x16xf32>
    %120 = vector.shape_cast %119 : vector<1x16x16xf32> to vector<16x16xf32>
    %c1_75 = arith.constant 1 : index
    %c0_76 = arith.constant 0 : index
    %c0_77 = arith.constant 0 : index
    %121 = vector.load %arg9[%c1_75, %c0_76, %c0_77] : memref<3x16x16xf32, #tpu.memory_space<vmem>>, vector<1x16x16xf32>
    %122 = vector.shape_cast %121 : vector<1x16x16xf32> to vector<16x16xf32>
    %c1_78 = arith.constant 1 : index
    %c0_79 = arith.constant 0 : index
    %c0_80 = arith.constant 0 : index
    %123 = vector.load %arg10[%c1_78, %c0_79, %c0_80] : memref<3x1x16xf32, #tpu.memory_space<vmem>>, vector<1x1x16xf32>
    %124 = vector.shape_cast %123 : vector<1x1x16xf32> to vector<1x16xf32>
    %c1_81 = arith.constant 1 : index
    %c0_82 = arith.constant 0 : index
    %c0_83 = arith.constant 0 : index
    %125 = vector.load %arg11[%c1_81, %c0_82, %c0_83] : memref<3x1x16xf32, #tpu.memory_space<vmem>>, vector<1x1x16xf32>
    %126 = vector.shape_cast %125 : vector<1x1x16xf32> to vector<1x16xf32>
    %cst_84 = arith.constant dense<0.000000e+00> : vector<8x16xf32>
    %127 = tpu.matmul %118, %120, %cst_84 {dimension_numbers = #tpu.dot_dimension_numbers<[1], [0], [0], [1], [0, 0, 1, 1], [], []>} : vector<8x16xf32>, vector<16x16xf32>, vector<8x16xf32> -> vector<8x16xf32>
    %128 = vector.broadcast %124 : vector<1x16xf32> to vector<8x16xf32>
    %129 = arith.addf %127, %128 : vector<8x16xf32>
    %cst_85 = arith.constant dense<0.000000e+00> : vector<8x16xf32>
    %130 = tpu.matmul %118, %122, %cst_85 {dimension_numbers = #tpu.dot_dimension_numbers<[1], [0], [0], [1], [0, 0, 1, 1], [], []>} : vector<8x16xf32>, vector<16x16xf32>, vector<8x16xf32> -> vector<8x16xf32>
    %131 = vector.broadcast %126 : vector<1x16xf32> to vector<8x16xf32>
    %132 = arith.addf %130, %131 : vector<8x16xf32>
    %cst_86 = arith.constant 0.000000e+00 : f32
    %133 = vector.broadcast %cst_86 : f32 to vector<8x16xf32>
    %134 = arith.subf %133, %132 : vector<8x16xf32>
    %135 = math.exp %134 : vector<8x16xf32>
    %cst_87 = arith.constant 1.000000e+00 : f32
    %136 = vector.broadcast %cst_87 : f32 to vector<8x16xf32>
    %137 = arith.addf %136, %135 : vector<8x16xf32>
    %cst_88 = arith.constant 1.000000e+00 : f32
    %138 = vector.broadcast %cst_88 : f32 to vector<8x16xf32>
    %139 = arith.divf %138, %137 : vector<8x16xf32>
    %140 = arith.mulf %129, %139 : vector<8x16xf32>
    %141 = arith.addf %118, %140 : vector<8x16xf32>
    %cst_89 = arith.constant 0.707106769 : f32
    %142 = vector.broadcast %cst_89 : f32 to vector<8x16xf32>
    %143 = arith.mulf %141, %142 : vector<8x16xf32>
    %cst_90 = arith.constant 0.000000e+00 : f32
    %144 = vector.broadcast %cst_90 : f32 to vector<8x16xf32>
    %145 = arith.maximumf %143, %144 : vector<8x16xf32>
    %146 = arith.addf %55, %145 : vector<8x16xf32>
    %c1_91 = arith.constant 1 : index
    %c0_92 = arith.constant 0 : index
    %c0_93 = arith.constant 0 : index
    %147 = vector.load %arg12[%c1_91, %c0_92, %c0_93] : memref<2x16x16xf32, #tpu.memory_space<vmem>>, vector<1x16x16xf32>
    %148 = vector.shape_cast %147 : vector<1x16x16xf32> to vector<16x16xf32>
    %cst_94 = arith.constant dense<0.000000e+00> : vector<8x16xf32>
    %149 = tpu.matmul %143, %148, %cst_94 {dimension_numbers = #tpu.dot_dimension_numbers<[1], [0], [0], [1], [0, 0, 1, 1], [], []>} : vector<8x16xf32>, vector<16x16xf32>, vector<8x16xf32> -> vector<8x16xf32>
    %c1_95 = arith.constant 1 : index
    %c0_96 = arith.constant 0 : index
    %c0_97 = arith.constant 0 : index
    %150 = vector.load %arg13[%c1_95, %c0_96, %c0_97] : memref<2x1x16xf32, #tpu.memory_space<vmem>>, vector<1x1x16xf32>
    %151 = vector.shape_cast %150 : vector<1x1x16xf32> to vector<1x16xf32>
    %152 = vector.broadcast %151 : vector<1x16xf32> to vector<8x16xf32>
    %153 = arith.addf %149, %152 : vector<8x16xf32>
    %154 = arith.mulf %153, %95 : vector<8x16xf32>
    %155 = vector.shape_cast %154 : vector<8x16xf32> to vector<8x16x1xf32>
    %156 = vector.shape_cast %154 : vector<8x16xf32> to vector<8x1x16xf32>
    %157 = vector.broadcast %156 : vector<8x1x16xf32> to vector<8x16x16xf32>
    %158 = vector.broadcast %155 : vector<8x16x1xf32> to vector<8x16x16xf32>
    %159 = arith.cmpf oge, %157, %158 : vector<8x16x16xf32>
    %160 = arith.extui %159 : vector<8x16x16xi1> to vector<8x16x16xi32>
    %161 = arith.sitofp %160 : vector<8x16x16xi32> to vector<8x16x16xf32>
    %cst_98 = arith.constant dense<0.000000e+00> : vector<8x16xf32>
    %162 = vector.multi_reduction <add>, %161, %cst_98 [2] : vector<8x16x16xf32> to vector<8x16xf32>
    %163 = vector.broadcast %156 : vector<8x1x16xf32> to vector<8x16x16xf32>
    %164 = arith.mulf %161, %163 : vector<8x16x16xf32>
    %cst_99 = arith.constant dense<0.000000e+00> : vector<8x16xf32>
    %165 = vector.multi_reduction <add>, %164, %cst_99 [2] : vector<8x16x16xf32> to vector<8x16xf32>
    %166 = arith.mulf %162, %154 : vector<8x16xf32>
    %cst_100 = arith.constant 1.000000e+00 : f32
    %167 = vector.broadcast %cst_100 : f32 to vector<8x16xf32>
    %168 = arith.addf %167, %166 : vector<8x16xf32>
    %169 = arith.cmpf ogt, %168, %165 : vector<8x16xf32>
    %170 = arith.extui %169 : vector<8x16xi1> to vector<8x16xi32>
    %171 = arith.sitofp %170 : vector<8x16xi32> to vector<8x16xf32>
    %172 = arith.mulf %171, %154 : vector<8x16xf32>
    %cst_101 = arith.constant dense<0.000000e+00> : vector<8xf32>
    %173 = vector.multi_reduction <add>, %172, %cst_101 [1] : vector<8x16xf32> to vector<8xf32>
    %174 = vector.shape_cast %173 : vector<8xf32> to vector<8x1xf32>
    %cst_102 = arith.constant dense<0.000000e+00> : vector<8xf32>
    %175 = vector.multi_reduction <add>, %171, %cst_102 [1] : vector<8x16xf32> to vector<8xf32>
    %176 = vector.shape_cast %175 : vector<8xf32> to vector<8x1xf32>
    %cst_103 = arith.constant 1.000000e+00 : f32
    %177 = vector.broadcast %cst_103 : f32 to vector<8x1xf32>
    %178 = arith.subf %174, %177 : vector<8x1xf32>
    %179 = arith.divf %178, %176 : vector<8x1xf32>
    %180 = vector.broadcast %179 : vector<8x1xf32> to vector<8x16xf32>
    %181 = arith.subf %154, %180 : vector<8x16xf32>
    %cst_104 = arith.constant 0.000000e+00 : f32
    %182 = vector.broadcast %cst_104 : f32 to vector<8x16xf32>
    %183 = arith.maximumf %181, %182 : vector<8x16xf32>
    %184 = arith.mulf %183, %6 : vector<8x16xf32>
    %c2 = arith.constant 2 : index
    %c0_105 = arith.constant 0 : index
    %c0_106 = arith.constant 0 : index
    %185 = vector.load %arg4[%c2, %c0_105, %c0_106] : memref<3x16x16xf32, #tpu.memory_space<vmem>>, vector<1x16x16xf32>
    %186 = vector.shape_cast %185 : vector<1x16x16xf32> to vector<16x16xf32>
    %c2_107 = arith.constant 2 : index
    %c0_108 = arith.constant 0 : index
    %c0_109 = arith.constant 0 : index
    %187 = vector.load %arg5[%c2_107, %c0_108, %c0_109] : memref<3x16x16xf32, #tpu.memory_space<vmem>>, vector<1x16x16xf32>
    %188 = vector.shape_cast %187 : vector<1x16x16xf32> to vector<16x16xf32>
    %c2_110 = arith.constant 2 : index
    %c0_111 = arith.constant 0 : index
    %c0_112 = arith.constant 0 : index
    %189 = vector.load %arg6[%c2_110, %c0_111, %c0_112] : memref<3x1x16xf32, #tpu.memory_space<vmem>>, vector<1x1x16xf32>
    %190 = vector.shape_cast %189 : vector<1x1x16xf32> to vector<1x16xf32>
    %c2_113 = arith.constant 2 : index
    %c0_114 = arith.constant 0 : index
    %c0_115 = arith.constant 0 : index
    %191 = vector.load %arg7[%c2_113, %c0_114, %c0_115] : memref<3x1x16xf32, #tpu.memory_space<vmem>>, vector<1x1x16xf32>
    %192 = vector.shape_cast %191 : vector<1x1x16xf32> to vector<1x16xf32>
    %cst_116 = arith.constant dense<0.000000e+00> : vector<8x16xf32>
    %193 = tpu.matmul %184, %186, %cst_116 {dimension_numbers = #tpu.dot_dimension_numbers<[1], [0], [0], [1], [0, 0, 1, 1], [], []>} : vector<8x16xf32>, vector<16x16xf32>, vector<8x16xf32> -> vector<8x16xf32>
    %194 = vector.broadcast %190 : vector<1x16xf32> to vector<8x16xf32>
    %195 = arith.addf %193, %194 : vector<8x16xf32>
    %cst_117 = arith.constant dense<0.000000e+00> : vector<8x16xf32>
    %196 = tpu.matmul %184, %188, %cst_117 {dimension_numbers = #tpu.dot_dimension_numbers<[1], [0], [0], [1], [0, 0, 1, 1], [], []>} : vector<8x16xf32>, vector<16x16xf32>, vector<8x16xf32> -> vector<8x16xf32>
    %197 = vector.broadcast %192 : vector<1x16xf32> to vector<8x16xf32>
    %198 = arith.addf %196, %197 : vector<8x16xf32>
    %cst_118 = arith.constant 0.000000e+00 : f32
    %199 = vector.broadcast %cst_118 : f32 to vector<8x16xf32>
    %200 = arith.subf %199, %198 : vector<8x16xf32>
    %201 = math.exp %200 : vector<8x16xf32>
    %cst_119 = arith.constant 1.000000e+00 : f32
    %202 = vector.broadcast %cst_119 : f32 to vector<8x16xf32>
    %203 = arith.addf %202, %201 : vector<8x16xf32>
    %cst_120 = arith.constant 1.000000e+00 : f32
    %204 = vector.broadcast %cst_120 : f32 to vector<8x16xf32>
    %205 = arith.divf %204, %203 : vector<8x16xf32>
    %206 = arith.mulf %195, %205 : vector<8x16xf32>
    %c2_121 = arith.constant 2 : index
    %c0_122 = arith.constant 0 : index
    %c0_123 = arith.constant 0 : index
    %207 = vector.load %arg8[%c2_121, %c0_122, %c0_123] : memref<3x16x16xf32, #tpu.memory_space<vmem>>, vector<1x16x16xf32>
    %208 = vector.shape_cast %207 : vector<1x16x16xf32> to vector<16x16xf32>
    %c2_124 = arith.constant 2 : index
    %c0_125 = arith.constant 0 : index
    %c0_126 = arith.constant 0 : index
    %209 = vector.load %arg9[%c2_124, %c0_125, %c0_126] : memref<3x16x16xf32, #tpu.memory_space<vmem>>, vector<1x16x16xf32>
    %210 = vector.shape_cast %209 : vector<1x16x16xf32> to vector<16x16xf32>
    %c2_127 = arith.constant 2 : index
    %c0_128 = arith.constant 0 : index
    %c0_129 = arith.constant 0 : index
    %211 = vector.load %arg10[%c2_127, %c0_128, %c0_129] : memref<3x1x16xf32, #tpu.memory_space<vmem>>, vector<1x1x16xf32>
    %212 = vector.shape_cast %211 : vector<1x1x16xf32> to vector<1x16xf32>
    %c2_130 = arith.constant 2 : index
    %c0_131 = arith.constant 0 : index
    %c0_132 = arith.constant 0 : index
    %213 = vector.load %arg11[%c2_130, %c0_131, %c0_132] : memref<3x1x16xf32, #tpu.memory_space<vmem>>, vector<1x1x16xf32>
    %214 = vector.shape_cast %213 : vector<1x1x16xf32> to vector<1x16xf32>
    %cst_133 = arith.constant dense<0.000000e+00> : vector<8x16xf32>
    %215 = tpu.matmul %206, %208, %cst_133 {dimension_numbers = #tpu.dot_dimension_numbers<[1], [0], [0], [1], [0, 0, 1, 1], [], []>} : vector<8x16xf32>, vector<16x16xf32>, vector<8x16xf32> -> vector<8x16xf32>
    %216 = vector.broadcast %212 : vector<1x16xf32> to vector<8x16xf32>
    %217 = arith.addf %215, %216 : vector<8x16xf32>
    %cst_134 = arith.constant dense<0.000000e+00> : vector<8x16xf32>
    %218 = tpu.matmul %206, %210, %cst_134 {dimension_numbers = #tpu.dot_dimension_numbers<[1], [0], [0], [1], [0, 0, 1, 1], [], []>} : vector<8x16xf32>, vector<16x16xf32>, vector<8x16xf32> -> vector<8x16xf32>
    %219 = vector.broadcast %214 : vector<1x16xf32> to vector<8x16xf32>
    %220 = arith.addf %218, %219 : vector<8x16xf32>
    %cst_135 = arith.constant 0.000000e+00 : f32
    %221 = vector.broadcast %cst_135 : f32 to vector<8x16xf32>
    %222 = arith.subf %221, %220 : vector<8x16xf32>
    %223 = math.exp %222 : vector<8x16xf32>
    %cst_136 = arith.constant 1.000000e+00 : f32
    %224 = vector.broadcast %cst_136 : f32 to vector<8x16xf32>
    %225 = arith.addf %224, %223 : vector<8x16xf32>
    %cst_137 = arith.constant 1.000000e+00 : f32
    %226 = vector.broadcast %cst_137 : f32 to vector<8x16xf32>
    %227 = arith.divf %226, %225 : vector<8x16xf32>
    %228 = arith.mulf %217, %227 : vector<8x16xf32>
    %229 = arith.addf %206, %228 : vector<8x16xf32>
    %cst_138 = arith.constant 0.707106769 : f32
    %230 = vector.broadcast %cst_138 : f32 to vector<8x16xf32>
    %231 = arith.mulf %229, %230 : vector<8x16xf32>
    %cst_139 = arith.constant 0.000000e+00 : f32
    %232 = vector.broadcast %cst_139 : f32 to vector<8x16xf32>
    %233 = arith.maximumf %231, %232 : vector<8x16xf32>
    %234 = arith.addf %146, %233 : vector<8x16xf32>
    %c0_140 = arith.constant 0 : index
    %c0_141 = arith.constant 0 : index
    %235 = vector.load %arg14[%c0_140, %c0_141] : memref<16x128xf32, #tpu.memory_space<vmem>>, vector<16x128xf32>
    %cst_142 = arith.constant dense<0.000000e+00> : vector<8x128xf32>
    %236 = tpu.matmul %234, %235, %cst_142 {dimension_numbers = #tpu.dot_dimension_numbers<[1], [0], [0], [1], [0, 0, 1, 1], [], []>} : vector<8x16xf32>, vector<16x128xf32>, vector<8x128xf32> -> vector<8x128xf32>
    %c0_143 = arith.constant 0 : index
    %c0_144 = arith.constant 0 : index
    %237 = vector.load %arg15[%c0_143, %c0_144] : memref<8x128xf32, #tpu.memory_space<vmem>>, vector<8x128xf32>
    tpu.vector_store %arg15[%c0_143, %c0_144], %236 {strides = array<i32>} : memref<8x128xf32, #tpu.memory_space<vmem>>, vector<8x128xf32>,
    return
  }
  func.func @transform_0(%arg0: i32) -> (i32, i32) {
    %c0_i32 = arith.constant 0 : i32
    %c0_i32_0 = arith.constant 0 : i32
    return %arg0, %c0_i32 : i32, i32
  }
  func.func @transform_1(%arg0: i32) -> (i32, i32) {
    %c0_i32 = arith.constant 0 : i32
    %c0_i32_0 = arith.constant 0 : i32
    %c0_i32_1 = arith.constant 0 : i32
    return %c0_i32, %c0_i32_0 : i32, i32
  }
  func.func @transform_2(%arg0: i32) -> (i32, i32) {
    %c0_i32 = arith.constant 0 : i32
    %c0_i32_0 = arith.constant 0 : i32
    %c0_i32_1 = arith.constant 0 : i32
    return %c0_i32, %c0_i32_0 : i32, i32
  }
  func.func @transform_3(%arg0: i32) -> (i32, i32, i32) {
    %c0_i32 = arith.constant 0 : i32
    %c0_i32_0 = arith.constant 0 : i32
    %c0_i32_1 = arith.constant 0 : i32
    %c0_i32_2 = arith.constant 0 : i32
    return %c0_i32, %c0_i32_0, %c0_i32_1 : i32, i32, i32
  }
  func.func @transform_4(%arg0: i32) -> (i32, i32, i32) {
    %c0_i32 = arith.constant 0 : i32
    %c0_i32_0 = arith.constant 0 : i32
    %c0_i32_1 = arith.constant 0 : i32
    %c0_i32_2 = arith.constant 0 : i32
    return %c0_i32, %c0_i32_0, %c0_i32_1 : i32, i32, i32
  }
  func.func @transform_5(%arg0: i32) -> (i32, i32, i32) {
    %c0_i32 = arith.constant 0 : i32
    %c0_i32_0 = arith.constant 0 : i32
    %c0_i32_1 = arith.constant 0 : i32
    %c0_i32_2 = arith.constant 0 : i32
    return %c0_i32, %c0_i32_0, %c0_i32_1 : i32, i32, i32
  }
  func.func @transform_6(%arg0: i32) -> (i32, i32, i32) {
    %c0_i32 = arith.constant 0 : i32
    %c0_i32_0 = arith.constant 0 : i32
    %c0_i32_1 = arith.constant 0 : i32
    %c0_i32_2 = arith.constant 0 : i32
    return %c0_i32, %c0_i32_0, %c0_i32_1 : i32, i32, i32
  }
  func.func @transform_7(%arg0: i32) -> (i32, i32, i32) {
    %c0_i32 = arith.constant 0 : i32
    %c0_i32_0 = arith.constant 0 : i32
    %c0_i32_1 = arith.constant 0 : i32
    %c0_i32_2 = arith.constant 0 : i32
    return %c0_i32, %c0_i32_0, %c0_i32_1 : i32, i32, i32
  }
  func.func @transform_8(%arg0: i32) -> (i32, i32, i32) {
    %c0_i32 = arith.constant 0 : i32
    %c0_i32_0 = arith.constant 0 : i32
    %c0_i32_1 = arith.constant 0 : i32
    %c0_i32_2 = arith.constant 0 : i32
    return %c0_i32, %c0_i32_0, %c0_i32_1 : i32, i32, i32
  }
  func.func @transform_9(%arg0: i32) -> (i32, i32, i32) {
    %c0_i32 = arith.constant 0 : i32
    %c0_i32_0 = arith.constant 0 : i32
    %c0_i32_1 = arith.constant 0 : i32
    %c0_i32_2 = arith.constant 0 : i32
    return %c0_i32, %c0_i32_0, %c0_i32_1 : i32, i32, i32
  }
  func.func @transform_10(%arg0: i32) -> (i32, i32, i32) {
    %c0_i32 = arith.constant 0 : i32
    %c0_i32_0 = arith.constant 0 : i32
    %c0_i32_1 = arith.constant 0 : i32
    %c0_i32_2 = arith.constant 0 : i32
    return %c0_i32, %c0_i32_0, %c0_i32_1 : i32, i32, i32
  }
  func.func @transform_11(%arg0: i32) -> (i32, i32, i32) {
    %c0_i32 = arith.constant 0 : i32
    %c0_i32_0 = arith.constant 0 : i32
    %c0_i32_1 = arith.constant 0 : i32
    %c0_i32_2 = arith.constant 0 : i32
    return %c0_i32, %c0_i32_0, %c0_i32_1 : i32, i32, i32
  }
  func.func @transform_12(%arg0: i32) -> (i32, i32, i32) {
    %c0_i32 = arith.constant 0 : i32
    %c0_i32_0 = arith.constant 0 : i32
    %c0_i32_1 = arith.constant 0 : i32
    %c0_i32_2 = arith.constant 0 : i32
    return %c0_i32, %c0_i32_0, %c0_i32_1 : i32, i32, i32
  }
  func.func @transform_13(%arg0: i32) -> (i32, i32) {
    %c0_i32 = arith.constant 0 : i32
    %c0_i32_0 = arith.constant 0 : i32
    %c0_i32_1 = arith.constant 0 : i32
    return %c0_i32, %c0_i32_0 : i32, i32
  }
  func.func @transform_14(%arg0: i32) -> (i32, i32) {
    %c0_i32 = arith.constant 0 : i32
    %c0_i32_0 = arith.constant 0 : i32
    return %arg0, %c0_i32 : i32, i32
  }
}

</mosaic_0001>

<bundles_post_ra>
// kernel: network_wrapper_forward.1
= control target key start
LH: loop header
LB: loop body
LE: loop exit
PB: predicated region body
PF: predicated region fallthrough
CT: control target
= control target key end

     0   :  { %s5998_s0 = inlined_call_operand.hbm [shape: f32[16,16], index: 0, kind: input, shape index: {}]   ;;  %s5999_s1 = inlined_call_operand.vmem [shape: f32[1,16], index: 1, kind: input, shape index: {}]   ;;  %s6000_s2 = inlined_call_operand.hbm [shape: f32[1,16], index: 2, kind: input, shape index: {}]   ;;  %s6001_s3 = inlined_call_operand.hbm [shape: f32[3,16,16], index: 3, kind: input, shape index: {}]   ;;  %s6002_s4 = inlined_call_operand.hbm [shape: f32[3,16,16], index: 4, kind: input, shape index: {}]   ;;  %s6003_s5 = inlined_call_operand.hbm [shape: f32[3,1,16], index: 5, kind: input, shape index: {}]   ;;  %s6004_s6 = inlined_call_operand.hbm [shape: f32[3,1,16], index: 6, kind: input, shape index: {}]   ;;  %s6005_s7 = inlined_call_operand.hbm [shape: f32[3,16,16], index: 7, kind: input, shape index: {}]   ;;  %s6006_s8 = inlined_call_operand.hbm [shape: f32[3,16,16], index: 8, kind: input, shape index: {}]   ;;  %s6007_s9 = inlined_call_operand.hbm [shape: f32[3,1,16], index: 9, kind: input, shape index: {}]   ;;  %s6008_s10 = inlined_call_operand.hbm [shape: f32[3,1,16], index: 10, kind: input, shape index: {}]   ;;  %s6009_s11 = inlined_call_operand.vmem [shape: f32[2,16,16], index: 11, kind: input, shape index: {}]   ;;  %s6010_s12 = inlined_call_operand.hbm [shape: f32[2,1,16], index: 12, kind: input, shape index: {}]   ;;  %s6011_s13 = inlined_call_operand.vmem [shape: f32[16,128], index: 13, kind: input, shape index: {}]   ;;  %s6012_s14 = inlined_call_operand.vmem [shape: f32[16,128], index: 14, kind: output, shape index: {}]  }
   0x1   :  { %6023 = sst [smem:[#allocation26_spill]] %s5998_s0 }
   0x2   :  { %6024 = sst [smem:[#allocation27_spill]] %s5999_s1 }
   0x3   :  { %6025 = sst [smem:[#allocation28_spill]] %s6000_s2 }
   0x4   :  { %6026 = sst [smem:[#allocation29_spill]] %s6002_s4 }
   0x5   :  { %6027 = sst [smem:[#allocation30_spill]] %s6004_s6 }
   0x6   :  { %6028 = sst [smem:[#allocation31_spill]] %s6009_s11 }
   0x7   :  { %6029 = sst [smem:[#allocation32_spill]] %s6011_s13 }
   0x8   :  { %6030 = sst [smem:[#allocation33_spill]] %s6012_s14 }
   0x9   :  { %19 = vsyncpa [#allocation3], 0 }
   0xa   :  { %21 = vsyncpa [#allocation3 + $0x1], 0 }
   0xb   :  { %22 = vsyncpa [#allocation5], 0 }
   0xc   :  { %23 = vsyncpa [#allocation8], 0 }
   0xd   :  { %24 = vsyncpa [#allocation11], 0 }
   0xe   :  { %25 = vsyncpa [#allocation14], 0 }
   0xf   :  { %26 = vsyncpa [#allocation17], 0  ;;  %s4813_s29 = smov 0   ;;  %s4815_s30 = smov 0  }
  0x10   :  { %s4817_s15 = smov 0   ;;  %s4819_s16 = smov 0  }
  0x11 LB: > { %s4718_s17 = smov [#allocation4]   ;;  %s4834_s19 = sadd.s32 4294967295, %s4716_s16   ;;  %s4716_s16 = sphi %s4819_s16, %s6063_s16   ;;  %s4712_s15 = sphi %s4817_s15, %s6062_s15   ;;  %s4708_s30 = sphi %s4815_s30, %s6061_s30   ;;  %s4704_s29 = sphi %s4813_s29, %s6060_s29  }
  0x12   : > { %s378_s18 = sshll.u32 %s4718_s17, 4  ;;  %p3770_p0 = scmp.ge.s32.totalorder %s4716_s16, 1  ;;  %s379_s18 = int_to_ptr.vmem [resolvable:$true] %s378_s18 }
  0x13   : > { %p6014_p1 = scmp.eq.s32.totalorder %s4834_s19, 0  ;;  %p362_p2 = scmp.lt.s32.totalorder %s4716_s16, 3 }
  0x14   : > { %s4719_s21 = smov [#allocation7]   ;;  %s4720_s24 = smov [#allocation10]  }
  0x15   : > { %p4839_p3 = pnand %p3770_p0, %p362_p2  ;;  %s401_s22 = sshll.u32 %s4719_s21, 4  ;;  %s4851_s22 = int_to_ptr.vmem [resolvable:$true] %s401_s22 }
  0x16   : > { %s4853_s25 = sshll.u32 %s4720_s24, 4  ;;  %s6034_s2 = sld [smem:[#allocation28_spill]]  ;;  %s428_s25 = int_to_ptr.vmem [resolvable:$true] %s4853_s25 }
  0x17   : > { %s6031_s20 = scalar_select %p4839_p3, 1, 0 }
  0x18   : > { %p4135_p4 = pneg %p4839_p3 }
  0x19   : > { %6032 = sst [smem:[#allocation25_spill]] %s6031_s20 }
  0x1a   : > { %p4847_p5 = pnand %p4135_p4, %p6014_p1 }
  0x1c   : > { %s4352_s28 = scalar_lea.hbm %s6034_s2, 16  ;;  %p4863_p7 = pneg %p4847_p5 }
  0x1d   : > { %p4353_p6 = scmp.ne.s32.totalorder %s6034_s2, %s4352_s28  ;;  %p4359_p10 = scmp.lt.u32.totalorder %s4352_s28, %s6034_s2 }
  0x1f   : > { %p4355_p8 = pnand %p4863_p7, %p4353_p6 }
  0x21   : > { %p4356_p9 = pneg %p4355_p8 }
  0x23   : > { %p4361_p11 = pnand %p4359_p10, %p4356_p9 }
  0x25   : > { %4364 = shalt.err (!%p4361_p11)
}
  0x26   : > { %s4365_s26 = scalar_lea.vmem %s379_s18, 16  ;;  %s4372_s14 = scalar_lea.vmem %s379_s18, 32 }
  0x27   : > { %p4366_p12 = scmp.ne.s32.totalorder %s379_s18, %s4365_s26  ;;  %p4373_p2 = scmp.lt.s32.totalorder %s379_s18, %s379_s18 }
  0x28   : > { %p4374_p4 = scmp.lt.s32.totalorder %s4372_s14, %s4365_s26 }
  0x29   : > { %p4368_p13 = pnand %p4366_p12, %p4863_p7 }
  0x2a   : > { %p4375_p1 = por %p4374_p4, %p4373_p2 }
  0x2b   : > { %p4369_p0 = pneg %p4368_p13 }
  0x2d   : > { %p4376_p3 = pnand %p4375_p1, %p4369_p0 }
  0x2f   : > { %4379 = shalt.err (!%p4376_p3)
}
  0x30   : > { %4138 = dma.hbm_to_vmem [thread:$0]  (!%p4847_p5), %s6034_s2, 16, %s379_s18, [#allocation5]  }
  0x31   : > { %s6036_s4 = sld [smem:[#allocation29_spill]] }
  0x37   : > { %s4380_s24 = scalar_lea.hbm %s6036_s4, 768 }
  0x38   : > { %p4381_p6 = scmp.ne.s32.totalorder %s6036_s4, %s4380_s24  ;;  %p4387_p1 = scmp.lt.u32.totalorder %s4380_s24, %s6036_s4 }
  0x3a   : > { %p4383_p8 = pnand %p4381_p6, %p4863_p7 }
  0x3c   : > { %p4384_p9 = pneg %p4383_p8 }
  0x3e   : > { %p4389_p3 = pnand %p4387_p1, %p4384_p9 }
  0x40   : > { %4392 = shalt.err (!%p4389_p3)
}
  0x41   : > { %s4393_s18 = scalar_lea.vmem %s4851_s22, 768  ;;  %p4401_p13 = scmp.lt.s32.totalorder %s4851_s22, %s4851_s22 }
  0x42   : > { %p4394_p10 = scmp.ne.s32.totalorder %s4851_s22, %s4393_s18  ;;  %p4402_p0 = scmp.lt.s32.totalorder %s4393_s18, %s4393_s18 }
  0x44   : > { %p4396_p11 = pnand %p4394_p10, %p4863_p7  ;;  %p4403_p2 = por %p4402_p0, %p4401_p13 }
  0x46   : > { %p4397_p12 = pneg %p4396_p11 }
  0x48   : > { %p4404_p4 = pnand %p4403_p2, %p4397_p12 }
  0x4a   : > { %4407 = shalt.err (!%p4404_p4)
}
  0x4b   : > { %s6017_s1 = smov 128   ;;  %s6019_s11 = smov 8  }
  0x4c   : > { %4144 = dma.hbm_to_vmem [thread:$0]  (!%p4847_p5), %s6036_s4, 768, %s4851_s22, [#allocation8], %s6017_s1, %s6017_s1, %s6019_s11  }
  0x4d   : > { %s6037_s6 = sld [smem:[#allocation30_spill]] }
  0x53   : > { %s4408_s24 = scalar_lea.hbm %s6037_s6, 48 }
  0x54   : > { %p4409_p6 = scmp.ne.s32.totalorder %s6037_s6, %s4408_s24  ;;  %p4415_p1 = scmp.lt.u32.totalorder %s4408_s24, %s6037_s6 }
  0x56   : > { %p4411_p8 = pnand %p4409_p6, %p4863_p7 }
  0x58   : > { %p4412_p9 = pneg %p4411_p8 }
  0x5a   : > { %p4417_p3 = pnand %p4415_p1, %p4412_p9 }
  0x5c   : > { %4420 = shalt.err (!%p4417_p3)
}
  0x5d   : > { %s4421_s27 = scalar_lea.vmem %s428_s25, 48  ;;  %s4428_s22 = scalar_lea.vmem %s428_s25, 64 }
  0x5e   : > { %p4422_p10 = scmp.ne.s32.totalorder %s428_s25, %s4421_s27  ;;  %p4429_p13 = scmp.lt.s32.totalorder %s428_s25, %s428_s25 }
  0x5f   : > { %p4430_p0 = scmp.lt.s32.totalorder %s4428_s22, %s4421_s27 }
  0x60   : > { %p4424_p11 = pnand %p4422_p10, %p4863_p7 }
  0x61   : > { %p4431_p2 = por %p4430_p0, %p4429_p13 }
  0x62   : > { %p4425_p12 = pneg %p4424_p11 }
  0x64   : > { %p4432_p4 = pnand %p4431_p2, %p4425_p12 }
  0x66   : > { %4435 = shalt.err (!%p4432_p4)
}
  0x67   : > { %s4723_s17 = smov 16   ;;  %s4724_s13 = smov 1  }
  0x68   : > { %4150 = dma.hbm_to_vmem [thread:$0]  (!%p4847_p5), %s6037_s6, 48, %s428_s25, [#allocation11], %s4723_s17, %s4723_s17, %s4724_s13  }
  0x69   : > { %s4725_s24 = smov [#allocation13]   ;;  %s4726_s14 = smov [#allocation16]  }
  0x6a   : > { %s453_s26 = sshll.u32 %s4725_s24, 4  ;;  %s479_s18 = sshll.u32 %s4726_s14, 4  ;;  %s454_s26 = int_to_ptr.vmem [resolvable:$true] %s453_s26  ;;  %s480_s18 = int_to_ptr.vmem [resolvable:$true] %s479_s18 }
  0x6b   : > { %s4436_s1 = scalar_lea.hbm %s6006_s8, 768 }
  0x6c   : > { %p4437_p6 = scmp.ne.s32.totalorder %s6006_s8, %s4436_s1  ;;  %p4443_p1 = scmp.lt.u32.totalorder %s4436_s1, %s6006_s8 }
  0x6e   : > { %p4439_p8 = pnand %p4437_p6, %p4863_p7 }
  0x70   : > { %p4440_p9 = pneg %p4439_p8 }
  0x72   : > { %p4445_p3 = pnand %p4443_p1, %p4440_p9 }
  0x74   : > { %4448 = shalt.err (!%p4445_p3)
}
  0x75   : > { %s4449_s25 = scalar_lea.vmem %s454_s26, 768  ;;  %p4457_p13 = scmp.lt.s32.totalorder %s454_s26, %s454_s26 }
  0x76   : > { %p4450_p10 = scmp.ne.s32.totalorder %s454_s26, %s4449_s25  ;;  %p4458_p0 = scmp.lt.s32.totalorder %s4449_s25, %s4449_s25 }
  0x78   : > { %p4452_p11 = pnand %p4450_p10, %p4863_p7  ;;  %p4459_p2 = por %p4458_p0, %p4457_p13 }
  0x7a   : > { %p4453_p12 = pneg %p4452_p11 }
  0x7c   : > { %p4460_p4 = pnand %p4459_p2, %p4453_p12 }
  0x7e   : > { %4463 = shalt.err (!%p4460_p4)
}
  0x7f   : > { %s6038_s4 = smov 8   ;;  %s6039_s11 = smov 128  }
  0x80   : > { %4156 = dma.hbm_to_vmem [thread:$0]  (!%p4847_p5), %s6006_s8, 768, %s454_s26, [#allocation14], %s6039_s11, %s6039_s11, %s6038_s4  }
  0x81   : > { %s4464_s28 = scalar_lea.hbm %s6008_s10, 48 }
  0x82   : > { %p4465_p6 = scmp.ne.s32.totalorder %s6008_s10, %s4464_s28  ;;  %p4471_p1 = scmp.lt.u32.totalorder %s4464_s28, %s6008_s10 }
  0x84   : > { %p4467_p8 = pnand %p4465_p6, %p4863_p7 }
  0x86   : > { %p4468_p9 = pneg %p4467_p8 }
  0x88   : > { %p4473_p3 = pnand %p4471_p1, %p4468_p9 }
  0x8a   : > { %4476 = shalt.err (!%p4473_p3)
}
  0x8b   : > { %s4477_s25 = scalar_lea.vmem %s480_s18, 48  ;;  %s4484_s26 = scalar_lea.vmem %s480_s18, 64 }
  0x8c   : > { %p4478_p10 = scmp.ne.s32.totalorder %s480_s18, %s4477_s25  ;;  %p4485_p13 = scmp.lt.s32.totalorder %s480_s18, %s480_s18 }
  0x8d   : > { %p4486_p0 = scmp.lt.s32.totalorder %s4484_s26, %s4477_s25 }
  0x8e   : > { %p4480_p11 = pnand %p4478_p10, %p4863_p7 }
  0x8f   : > { %p4487_p2 = por %p4486_p0, %p4485_p13 }
  0x90   : > { %p4481_p12 = pneg %p4480_p11 }
  0x92   : > { %p4488_p4 = pnand %p4487_p2, %p4481_p12 }
  0x94   : > { %4491 = shalt.err (!%p4488_p4)
}
  0x95   : > { %4162 = dma.hbm_to_vmem [thread:$0]  (!%p4847_p5), %s6008_s10, 48, %s480_s18, [#allocation17], %s4723_s17, %s4723_s17, %s4724_s13  }
  0x96   : > { %s4727_s1 = smov [#allocation6]   ;;  %s4728_s28 = smov [#allocation9]  }
  0x97   : > { %s388_s2 = sshll.u32 %s4727_s1, 4  ;;  %s414_s24 = sshll.u32 %s4728_s28, 4  ;;  %s389_s2 = int_to_ptr.vmem [resolvable:$true] %s388_s2  ;;  %s415_s24 = int_to_ptr.vmem [resolvable:$true] %s414_s24 }
  0x98   : > { %s4492_s22 = scalar_lea.hbm %s6001_s3, 768 }
  0x99   : > { %p4493_p6 = scmp.ne.s32.totalorder %s6001_s3, %s4492_s22  ;;  %p4499_p1 = scmp.lt.u32.totalorder %s4492_s22, %s6001_s3 }
  0x9b   : > { %p4495_p8 = pnand %p4493_p6, %p4863_p7 }
  0x9d   : > { %p4496_p9 = pneg %p4495_p8 }
  0x9f   : > { %p4501_p3 = pnand %p4499_p1, %p4496_p9 }
  0xa1   : > { %4504 = shalt.err (!%p4501_p3)
}
  0xa2   : > { %s4505_s18 = scalar_lea.vmem %s389_s2, 768  ;;  %p4513_p13 = scmp.lt.s32.totalorder %s389_s2, %s389_s2 }
  0xa3   : > { %p4506_p10 = scmp.ne.s32.totalorder %s389_s2, %s4505_s18  ;;  %p4514_p0 = scmp.lt.s32.totalorder %s4505_s18, %s4505_s18 }
  0xa5   : > { %p4508_p11 = pnand %p4506_p10, %p4863_p7  ;;  %p4515_p2 = por %p4514_p0, %p4513_p13 }
  0xa7   : > { %p4509_p12 = pneg %p4508_p11 }
  0xa9   : > { %p4516_p4 = pnand %p4515_p2, %p4509_p12 }
  0xab   : > { %4519 = shalt.err (!%p4516_p4)
}
  0xac   : > { %4141 = dma.hbm_to_vmem [thread:$0]  (!%p4847_p5), %s6001_s3, 768, %s389_s2, [#allocation5], %s6039_s11, %s6039_s11, %s6038_s4  }
  0xad   : > { %s4520_s14 = scalar_lea.hbm %s6003_s5, 48 }
  0xae   : > { %p4521_p6 = scmp.ne.s32.totalorder %s6003_s5, %s4520_s14  ;;  %p4527_p1 = scmp.lt.u32.totalorder %s4520_s14, %s6003_s5 }
  0xb0   : > { %p4523_p8 = pnand %p4521_p6, %p4863_p7 }
  0xb2   : > { %p4524_p9 = pneg %p4523_p8 }
  0xb4   : > { %p4529_p3 = pnand %p4527_p1, %p4524_p9 }
  0xb6   : > { %4532 = shalt.err (!%p4529_p3)
}
  0xb7   : > { %s4533_s0 = scalar_lea.vmem %s415_s24, 48  ;;  %s4540_s2 = scalar_lea.vmem %s415_s24, 64 }
  0xb8   : > { %p4534_p10 = scmp.ne.s32.totalorder %s415_s24, %s4533_s0  ;;  %p4541_p13 = scmp.lt.s32.totalorder %s415_s24, %s415_s24 }
  0xb9   : > { %p4542_p0 = scmp.lt.s32.totalorder %s4540_s2, %s4533_s0 }
  0xba   : > { %p4536_p11 = pnand %p4534_p10, %p4863_p7 }
  0xbb   : > { %p4543_p2 = por %p4542_p0, %p4541_p13 }
  0xbc   : > { %p4537_p12 = pneg %p4536_p11 }
  0xbe   : > { %p4544_p4 = pnand %p4543_p2, %p4537_p12 }
  0xc0   : > { %4547 = shalt.err (!%p4544_p4)
}
  0xc1   : > { %4147 = dma.hbm_to_vmem [thread:$0]  (!%p4847_p5), %s6003_s5, 48, %s415_s24, [#allocation8], %s4723_s17, %s4723_s17, %s4724_s13  }
  0xc2   : > { %s4729_s20 = smov [#allocation12]   ;;  %s4730_s28 = smov [#allocation15]  }
  0xc3   : > { %s440_s1 = sshll.u32 %s4729_s20, 4  ;;  %s466_s14 = sshll.u32 %s4730_s28, 4  ;;  %s441_s1 = int_to_ptr.vmem [resolvable:$true] %s440_s1  ;;  %s467_s14 = int_to_ptr.vmem [resolvable:$true] %s466_s14 }
  0xc4   : > { %s4548_s25 = scalar_lea.hbm %s6005_s7, 768 }
  0xc5   : > { %p4549_p6 = scmp.ne.s32.totalorder %s6005_s7, %s4548_s25  ;;  %p4555_p1 = scmp.lt.u32.totalorder %s4548_s25, %s6005_s7 }
  0xc7   : > { %p4551_p8 = pnand %p4549_p6, %p4863_p7 }
  0xc9   : > { %p4552_p9 = pneg %p4551_p8 }
  0xcb   : > { %p4557_p3 = pnand %p4555_p1, %p4552_p9 }
  0xcd   : > { %4560 = shalt.err (!%p4557_p3)
}
  0xce   : > { %s4561_s24 = scalar_lea.vmem %s441_s1, 768  ;;  %p4569_p13 = scmp.lt.s32.totalorder %s441_s1, %s441_s1 }
  0xcf   : > { %p4562_p10 = scmp.ne.s32.totalorder %s441_s1, %s4561_s24  ;;  %p4570_p0 = scmp.lt.s32.totalorder %s4561_s24, %s4561_s24 }
  0xd1   : > { %p4564_p11 = pnand %p4562_p10, %p4863_p7  ;;  %p4571_p2 = por %p4570_p0, %p4569_p13 }
  0xd3   : > { %p4565_p12 = pneg %p4564_p11 }
  0xd5   : > { %p4572_p4 = pnand %p4571_p2, %p4565_p12 }
  0xd7   : > { %4575 = shalt.err (!%p4572_p4)
}
  0xd8   : > { %4153 = dma.hbm_to_vmem [thread:$0]  (!%p4847_p5), %s6005_s7, 768, %s441_s1, [#allocation11], %s6039_s11, %s6039_s11, %s6038_s4  }
  0xd9   : > { %s4576_s22 = scalar_lea.hbm %s6007_s9, 48 }
  0xda   : > { %p4577_p6 = scmp.ne.s32.totalorder %s6007_s9, %s4576_s22  ;;  %p4583_p1 = scmp.lt.u32.totalorder %s4576_s22, %s6007_s9 }
  0xdc   : > { %p4579_p8 = pnand %p4577_p6, %p4863_p7 }
  0xde   : > { %p4580_p9 = pneg %p4579_p8 }
  0xe0   : > { %p4585_p3 = pnand %p4583_p1, %p4580_p9 }
  0xe2   : > { %4588 = shalt.err (!%p4585_p3)
}
  0xe3   : > { %s4589_s18 = scalar_lea.vmem %s467_s14, 48  ;;  %s4596_s4 = scalar_lea.vmem %s467_s14, 64 }
  0xe4   : > { %p4590_p10 = scmp.ne.s32.totalorder %s467_s14, %s4589_s18  ;;  %p4597_p13 = scmp.lt.s32.totalorder %s467_s14, %s467_s14 }
  0xe5   : > { %p4598_p0 = scmp.lt.s32.totalorder %s4596_s4, %s4589_s18 }
  0xe6   : > { %p4592_p11 = pnand %p4590_p10, %p4863_p7 }
  0xe7   : > { %p4599_p2 = por %p4598_p0, %p4597_p13 }
  0xe8   : > { %p4593_p12 = pneg %p4592_p11 }
  0xea   : > { %p4600_p4 = pnand %p4599_p2, %p4593_p12 }
  0xec   : > { %4603 = shalt.err (!%p4600_p4)
}
  0xed   : > { %4159 = dma.hbm_to_vmem [thread:$0]  (!%p4847_p5), %s6007_s9, 48, %s467_s14, [#allocation14], %s4723_s17, %s4723_s17, %s4724_s13  }
  0xee   : > { %s4731_s24 = smov [#allocation18]   ;;  %s4604_s27 = scalar_lea.hbm %s6010_s12, 32 }
  0xef   : > { %s495_s6 = sshll.u32 %s4731_s24, 4  ;;  %p4605_p6 = scmp.ne.s32.totalorder %s6010_s12, %s4604_s27  ;;  %s496_s6 = int_to_ptr.vmem [resolvable:$true] %s495_s6 }
  0xf0   : > { %p4611_p1 = scmp.lt.u32.totalorder %s4604_s27, %s6010_s12 }
  0xf1   : > { %p4607_p8 = pnand %p4605_p6, %p4863_p7 }
  0xf3   : > { %p4608_p9 = pneg %p4607_p8 }
  0xf5   : > { %p4613_p3 = pnand %p4611_p1, %p4608_p9 }
  0xf7   : > { %4616 = shalt.err (!%p4613_p3)
}
  0xf8   : > { %s4617_s14 = scalar_lea.vmem %s496_s6, 32  ;;  %p4625_p13 = scmp.lt.s32.totalorder %s496_s6, %s496_s6 }
  0xf9   : > { %p4618_p10 = scmp.ne.s32.totalorder %s496_s6, %s4617_s14  ;;  %p4626_p0 = scmp.lt.s32.totalorder %s4617_s14, %s4617_s14 }
  0xfb   : > { %p4620_p11 = pnand %p4618_p10, %p4863_p7  ;;  %p4627_p2 = por %p4626_p0, %p4625_p13 }
  0xfd   : > { %p4621_p12 = pneg %p4620_p11 }
  0xff   : > { %p4628_p4 = pnand %p4627_p2, %p4621_p12 }
 0x101   : > { %4631 = shalt.err (!%p4628_p4)
}
 0x102   : > { %4165 = dma.hbm_to_vmem [thread:$0]  (!%p4847_p5), %s6010_s12, 32, %s496_s6, [#allocation17], %s4723_s17, %s4723_s17, %s4724_s13  }
 0x103   : > { %s5075_s23 = sadd.s32 1, %s4716_s16   ;;  %s39_s21 = sadd.s32 1, %s4712_s15 }
 0x104   : > { %s36_s4 = ssub.s32 %s4716_s16, %s5075_s23  ;;  %p46_p7 = scmp.ne.s32.totalorder %s4712_s15, %s4708_s30 }
 0x105   : > { %p37_p6 = scmp.eq.s32.totalorder %s36_s4, 0  ;;  %p47_p8 = scmp.eq.s32.totalorder %s4716_s16, 0 }
 0x106   : > { %p52_p9 = scmp.ne.s32.totalorder %s4708_s30, %s4704_s29  ;;  %p4180_p1 = scmp.lt.s32.totalorder %s4716_s16, 2 }
 0x107   : > { %s5087_s11 = scalar_select %p37_p6, %s4712_s15, %s39_s21  }
 0x108   : > { %p48_p3 = por %p47_p8, %p46_p7  ;;  %p6040_p10 = scmp.eq.s32.totalorder %s4834_s19, 0 }
 0x109   : > { %s512_s24 = sand.u32 1, %s4712_s15   ;;  %s3783_s17 = sshll.u32 %s4716_s16, 7 }
 0x10a   : > { %p5091_p11 = por %p6040_p10, %p52_p9  ;;  %s3782_s13 = sshll.u32 %s512_s24, 3 }
 0x10b   : > { %s6042_s28 = sld [smem:[#allocation26_spill]]  ;;  %s516_s29 = scalar_lea.vmem [#allocation2], %s3782_s13 }
 0x10c   : > { %s523_s22 = sshll.u32 %s516_s29, 4  ;;  %p5102_p5 = pnand %p4180_p1, %p48_p3  ;;  %s5106_s22 = int_to_ptr.vmem [resolvable:$true] %s523_s22 }
 0x10d   : > { %s513_s16 = scalar_lea.sflag [#allocation3], %s512_s24 }
 0x10e   : > { %p4634_p13 = pneg %p5102_p5 }
 0x111   : > { %s5100_s27 = scalar_lea.hbm %s6042_s28, %s3783_s17  ;;  %s4637_s2 = scalar_lea.hbm %s6042_s28, 256 }
 0x112   : > { %s4632_s26 = scalar_lea.hbm %s5100_s27, 128  ;;  %p4638_p4 = scmp.lt.u32.totalorder %s5100_s27, %s6042_s28 }
 0x113   : > { %p4633_p12 = scmp.ne.s32.totalorder %s5100_s27, %s4632_s26  ;;  %p4639_p7 = scmp.lt.u32.totalorder %s4637_s2, %s4632_s26 }
 0x114   : > { %p4641_p8 = scmp.lt.u32.totalorder %s4632_s26, %s5100_s27 }
 0x115   : > { %p4635_p0 = pnand %p4634_p13, %p4633_p12  ;;  %p4640_p6 = por %p4639_p7, %p4638_p4 }
 0x117   : > { %p4636_p2 = pneg %p4635_p0  ;;  %p4642_p9 = por %p4641_p8, %p4640_p6 }
 0x119   : > { %p4643_p1 = pnand %p4642_p9, %p4636_p2 }
 0x11b   : > { %4646 = shalt.err (!%p4643_p1)
}
 0x11c   : > { %s4647_s4 = scalar_lea.vmem %s5106_s22, 128  ;;  %s4732_s24 = smov [#allocation2]  }
 0x11d   : > { %p4648_p3 = scmp.ne.s32.totalorder %s5106_s22, %s4647_s4  ;;  %s4652_s17 = sshll.u32 %s4732_s24, 4  ;;  %s4653_s17 = int_to_ptr.vmem [resolvable:$false] %s4652_s17 }
 0x11e   : > { %s4654_s13 = scalar_lea.vmem %s4653_s17, 256  ;;  %p4655_p0 = scmp.lt.s32.totalorder %s5106_s22, %s4653_s17 }
 0x11f   : > { %p4650_p10 = pnand %p4648_p3, %p4634_p13  ;;  %p4656_p4 = scmp.lt.s32.totalorder %s4654_s13, %s4647_s4 }
 0x121   : > { %p4651_p12 = pneg %p4650_p10  ;;  %p4657_p7 = por %p4656_p4, %p4655_p0 }
 0x123   : > { %p4658_p6 = pnand %p4657_p7, %p4651_p12 }
 0x125   : > { %4661 = shalt.err (!%p4658_p6)
}
 0x126   : > { %4169 = dma.hbm_to_vmem [thread:$0]  (!%p5102_p5), %s5100_s27, 128, %s5106_s22, %s513_s16  }
 0x127   : > { %s6044_s6 = sld [smem:[#allocation25_spill]] }
 0x12d   : > { %p6045_p2 = scmp.ne.s32.totalorder %s6044_s6, 0 }
 0x12e   : > { %s534_s20 = sand.u32 (!%p6045_p2), 1, %s4708_s30  }
 0x12f   : > { %532 = sbr.rel (%p6045_p2) target bundleno = 3767 (0xeb7), region = 76  ;;  %s3785_s29 = sshll.u32 (!%p6045_p2), %s534_s20, 3 }
 0x130   : > { %s535_s26 = scalar_lea.sflag (!%p6045_p2), [#allocation3], %s534_s20  ;;  %s538_s0 = scalar_lea.vmem (!%p6045_p2), [#allocation2], %s3785_s29 }
 0x136   : > { %4679 = dma.done.wait (%p5091_p11), %s535_s26, 128  }
 0x137   : > { %4681 = vsyncadd (%p5091_p11), %s535_s26, 4294967168  ;;  %p6046_p13 = scmp.eq.s32.totalorder %s4834_s19, 0 }
 0x139   : > { %4683 = dma.done.wait (%p6046_p13), [#allocation5], 784   ;;  %p6047_p8 = pmov %p6046_p13 }
 0x13b   : > { %4685 = vsyncadd (%p6047_p8), [#allocation5], 4294966512  ;;  %p6048_p5 = pmov %p6047_p8 }
 0x13d   : > { %4687 = dma.done.wait (%p6048_p5), [#allocation8], 816   ;;  %p6049_p9 = pmov %p6048_p5 }
 0x13e   : > { %p6050_p1 = pmov %p6048_p5 }
 0x13f   : > { %4689 = vsyncadd (%p6049_p9), [#allocation8], 4294966480 }
 0x140   : > { %4691 = dma.done.wait (%p6050_p1), [#allocation11], 816   ;;  %p6051_p3 = pmov %p6050_p1 }
 0x141   : > { %p6052_p11 = pmov %p6050_p1 }
 0x142   : > { %4693 = vsyncadd (%p6051_p3), [#allocation11], 4294966480 }
 0x143   : > { %4695 = dma.done.wait (%p6052_p11), [#allocation14], 816   ;;  %p6053_p10 = pmov %p6050_p1 }
 0x144   : > { %p6054_p12 = pmov %p6050_p1 }
 0x145   : > { %4697 = vsyncadd (%p6053_p10), [#allocation14], 4294966480 }
 0x146   : > { %4699 = dma.done.wait (%p6054_p12), [#allocation17], 80   ;;  %p6055_p0 = pmov %p6050_p1 }
 0x147   : > { %v4733_v0 = vmov 0.0|0.0   ;;  %vm4734_vm0 = vmmov 0   ;;  %v4735_v1 = vmov 0.0   ;;  %v645_v2 = vld [vmem:[#allocation7] sm:$0xff]  ;;  %v646_v3 = vld [vmem:[#allocation7 + $0x8] sm:$0xff]  ;;  %s6056_s22 = sld [smem:[#allocation27_spill]]  ;;  %v1064_v52 = vlaneseq }
 0x148   : > { %4701 = vsyncadd (%p6055_p0), [#allocation17], 4294967216  ;;  %4051 = vmatprep.subr.bf16.mxu1 %v4733_v0  ;;  %3954 = vmatprep.mubr.msk.f32.mxu1 %vm4734_vm0, %v4735_v1  ;;  %v626_v4 = vld [vmem:[%s538_s0] sm:$0xff]  ;;  %v4052_v5 = vpack.c.bf16 %v646_v3, %v645_v2  ;;  %v3798_v7 = vld [vmem:[#allocation4] ss:$0 sm:$0xff]  ;;  %vm655_vm1 = vcmask 130048  }
 0x149   : > { %4048 = vmatprep.subr.bf16.mxu0 %v4733_v0  ;;  %3947 = vmatprep.mubr.msk.f32.mxu0 %vm4734_vm0, %v4735_v1  ;;  %v643_v8 = vld [vmem:[#allocation6] sm:$0xff]  ;;  %v644_v10 = vld [vmem:[#allocation6 + $0x8] sm:$0xff]  ;;  %v814_v13 = vld [vmem:[#allocation13] sm:$0xff]  ;;  %s6057_s14 = sld [smem:[#allocation31_spill]]  ;;  %v5199_v53 = vshrl.u32 %v1064_v52, 7  ;;  %v1667_v54 = vand.u32 127, %v1064_v52 }
 0x14a   : > { %4053 = vmatpush3.bf16.msra.mxu1 %v4052_v5  ;;  %v4049_v11 = vpack.c.bf16 %v644_v10, %v643_v8  ;;  %v815_v14 = vld [vmem:[#allocation13 + $0x8] sm:$0xff]  ;;  %v812_v15 = vld [vmem:[#allocation12] sm:$0xff]  ;;  %v813_v17 = vld [vmem:[#allocation12 + $0x8] sm:$0xff]  ;;  %s6058_s20 = sld [smem:[#allocation32_spill]]  ;;  %p622_p4 = scmp.lt.s32.totalorder %s4834_s19, 1 }
 0x14b   : > { %4057 = vmatprep.subr.bf16.mxu1 %v4733_v0  ;;  %v4058_v16 = vpack.c.bf16 %v815_v14, %v814_v13  ;;  %v4055_v18 = vpack.c.bf16 %v813_v17, %v812_v15  ;;  %v3801_v19 = vld [vmem:[#allocation10] ss:$0 sm:$0xff]  ;;  %v3799_v29 = vld [vmem:[#allocation9] ss:$0 sm:$0xff]  ;;  %v3805_v36 = vld [vmem:[#allocation16] ss:$0 sm:$0xff]  ;;  %v5202_v55 = vsub.s32 %v1667_v54, %v5199_v53 }
 0x14c   : > { %4050 = vmatpush3.bf16.msra.mxu0 %v4049_v11  ;;  %v3803_v46 = vld [vmem:[#allocation15] ss:$0 sm:$0xff]  ;;  %v1672_v56 = vadd.s32 4294967288, %v1667_v54  ;;  %v3807_v58 = vld [vmem:[#allocation18] ss:$0 sm:$0xff]  ;;  %v5208_v59 = vsub.s32 0, %v5199_v53 }
 0x14d   : > { %v3797_v6 = vld [vmem:[%s6056_s22] ss:$0 sm:$0xff]  ;;  %4054 = vmatprep.subr.bf16.mxu0 %v4733_v0  ;;  %v1077_v60 = vsub.s32 1, %v5199_v53  ;;  %v1110_v8 = vsub.s32 4, %v5199_v53  ;;  %v1121_v10 = vsub.s32 5, %v5199_v53  ;;  %v1132_v13 = vsub.s32 6, %v5199_v53 }
 0x14e   : > { %v634_v9 = vmul.f32 %v3797_v6, %v626_v4  ;;  %v5205_v57 = vsub.s32 %v1672_v56, %v5199_v53  ;;  %v1088_v4 = vsub.s32 2, %v5199_v53  ;;  %v1099_v6 = vsub.s32 3, %v5199_v53  ;;  %s6065_s19 = smov (!%p622_p4, %s4834_s19), 1  ;;  %s6059_s22 = sld [smem:[#allocation33_spill]] }
 0x14f   : > { %v982_v33 = vld [vmem:[%s6057_s14] sm:$0xff]  ;;  %v983_v34 = vld [vmem:[%s6057_s14 + $0x8] sm:$0xff]  ;;  %v1143_v15 = vsub.s32 7, %v5199_v53  ;;  %v4736_v17 = vmov 1966171168   ;;  %s3796_s0 = sshll.u32 %s6065_s19, 3 }
 0x150   : > { %v5169_v12 = vadd.f32 %v3798_v7, %v634_v9  ;;  %v4061_v35 = vpack.c.bf16 %v983_v34, %v982_v33 }
 0x152   : > { %3955 = vmatmul.mubr.msk.f32.vlgmr.msra.gmra.mrb[0].mxu1 %vm655_vm1, %v5169_v12  ;;  %3948 = vmatmul.mubr.msk.f32.vlgmr.msra.gmra.mrb[0].mxu0 %vm655_vm1, %v5169_v12 }
 0x153   : > { %3968 = vmatprep.mubr.msk.f32.mxu1 %vm4734_vm0, %v4735_v1  ;;  %3961 = vmatprep.mubr.msk.f32.mxu0 %vm4734_vm0, %v4735_v1 }
 0x154   : > { %4059 = vmatpush3.bf16.msra.mxu1 %v4058_v16  ;;  %4056 = vmatpush3.bf16.msra.mxu0 %v4055_v18  ;;  %v1155_v18 = vunpack.c.l.s4 %v4736_v17  ;;  %s625_s25 = scalar_lea.vmem %s6059_s22, %s3796_s0 }
 0x155   : > { %4063 = vmatprep.subr.bf16.mxu1 %v4733_v0  ;;  %4060 = vmatprep.subr.bf16.mxu0 %v4733_v0 }
 0x225   : > { %v801_v20 = vpop.f32.mrb[0].mxu1  ;;  %v725_v23 = vpop.f32.mrb[0].mxu0 }
 0x226   : > { %v802_v21 = vadd.f32 %v3801_v19, %v801_v20  ;;  %v3956_v22 = vpop.f32.mrb[1].mxu1  ;;  %v3949_v25 = vpop.f32.mrb[1].mxu0  ;;  %v726_v30 = vadd.f32 %v3799_v29, %v725_v23  ;;  %v1156_v19 = vunpack.c.0.s8 %v1155_v18 }
 0x228   : > { %v805_v24 = vsub.f32 0.0, %v802_v21  ;;  %v5247_v20 = vsub.s32 %v1156_v19, %v5199_v53 }
 0x22a   : > { %v806_v26 = vmul.f32 1.442695, %v805_v24 }
 0x22c   : > { %4324 = vpow2.f32 %v806_v26 }
 0x236   : > { %v4325_v27 = vpop.eup %4324 }
 0x237   : > { %v808_v28 = vadd.f32 1.0, %v4325_v27 }
 0x239   : > { %4326 = vrcp.f32 %v808_v28 }
 0x243   : > { %v4327_v31 = vpop.eup %4326 }
 0x244   : > { %v811_v32 = vmul.f32 %v4327_v31, %v726_v30 }
 0x246   : > { %3962 = vmatmul.mubr.msk.f32.vlgmr.msra.gmra.mrb[2].mxu0 %vm655_vm1, %v811_v32  ;;  %3969 = vmatmul.mubr.msk.f32.vlgmr.msra.gmra.mrb[2].mxu1 %vm655_vm1, %v811_v32 }
 0x247   : > { %3975 = vmatprep.mubr.msk.f32.mxu0 %vm4734_vm0, %v4735_v1  ;;  %3982 = vmatprep.mubr.msk.f32.mxu1 %vm4734_vm0, %v4735_v1 }
 0x248   : > { %4062 = vmatpush3.bf16.msra.mxu0 %v4061_v35 }
 0x249   : > { %4066 = vmatprep.subr.bf16.mxu0 %v4733_v0 }
 0x319   : > { %v893_v37 = vpop.f32.mrb[2].mxu0  ;;  %v969_v38 = vpop.f32.mrb[2].mxu1 }
 0x31a   : > { %v970_v39 = vadd.f32 %v3805_v36, %v969_v38  ;;  %v3963_v40 = vpop.f32.mrb[3].mxu0  ;;  %v3970_v41 = vpop.f32.mrb[3].mxu1  ;;  %v894_v47 = vadd.f32 %v3803_v46, %v893_v37 }
 0x31c   : > { %v973_v42 = vsub.f32 0.0, %v970_v39 }
 0x31e   : > { %v974_v43 = vmul.f32 1.442695, %v973_v42 }
 0x320   : > { %4328 = vpow2.f32 %v974_v43 }
 0x32a   : > { %v4329_v44 = vpop.eup %4328 }
 0x32b   : > { %v976_v45 = vadd.f32 1.0, %v4329_v44 }
 0x32d   : > { %4330 = vrcp.f32 %v976_v45 }
 0x337   : > { %v4331_v48 = vpop.eup %4330 }
 0x338   : > { %v979_v49 = vmul.f32 %v4331_v48, %v894_v47 }
 0x33a   : > { %v980_v50 = vadd.f32 %v979_v49, %v811_v32 }
 0x33c   : > { %v981_v51 = vmul.f32 0.70710677, %v980_v50 }
 0x33e   : > { %3976 = vmatmul.mubr.msk.f32.vlgmr.msra.gmra.mrb[4].mxu0 %vm655_vm1, %v981_v51 }
 0x33f   : > { %3989 = vmatprep.mubr.msk.f32.mxu0 %vm4734_vm0, %v4735_v1 }
 0x411   : > { %v1060_v61 = vpop.f32.mrb[4].mxu0 }
 0x412   : > { %v5211_v62 = vadd.f32 %v3807_v58, %v1060_v61  ;;  %v3977_v63 = vpop.f32.mrb[5].mxu0 }
 0x414   : > { %v1078_v2 = vrot.slane %v5211_v62, %v1077_v60  ;;  %v1067_v3 = vrot.slane %v5211_v62, %v5208_v59  ;;  %v1089_v5 = vrot.slane %v5211_v62, %v1088_v4  ;;  %v1100_v7 = vrot.slane %v5211_v62, %v1099_v6 }
 0x415   : > { %v1111_v9 = vrot.slane %v5211_v62, %v1110_v8  ;;  %v1122_v11 = vrot.slane %v5211_v62, %v1121_v10  ;;  %v1133_v14 = vrot.slane %v5211_v62, %v1132_v13  ;;  %v5242_v16 = vrot.slane %v5211_v62, %v1143_v15 }
 0x416   : > { %1080 = vbcast.lane.b32.xlu1 %v1078_v2, 256  ;;  %1069 = vbcast.lane.b32.xlu0 %v1067_v3, 256  ;;  %v1160_v21 = vrot.slane %v5211_v62, %v5247_v20  ;;  %v1153_v30 = vcombine.high %v5211_v62, %v5211_v62 }
 0x418   : > { %v1168_v22 = vcombine.high %v1160_v21, %v1160_v21  ;;  %v1176_v24 = vrot.slane %v1160_v21, %v5247_v20  ;;  %v1167_v37 = vrot.slane %v1153_v30, %v5247_v20 }
 0x41a   : > { %1084 = vbcast.lane.b32.xlu1 %v1078_v2, 264  ;;  %1073 = vbcast.lane.b32.xlu0 %v1067_v3, 264  ;;  %v1190_v23 = vrot.slane %v1168_v22, %v5247_v20  ;;  %v5257_v26 = vrot.slane %v1176_v24, %v5208_v59  ;;  %v1198_v32 = vcombine.high %v1176_v24, %v1176_v24 }
 0x41b   : > { %v1183_v46 = vrot.slane %v1167_v37, %v5247_v20  ;;  %v1169_v50 = vcombine.high %v1167_v37, %v1167_v37 }
 0x41c   : > { %v5254_v25 = vrot.slane %v1190_v23, %v5208_v59  ;;  %v5278_v38 = vrot.slane %v1198_v32, %v5208_v59  ;;  %v1200_v41 = vcombine.high %v1190_v23, %v1190_v23 }
 0x41d   : > { %v5309_v58 = vrot.slane %v1183_v46, %v5208_v59  ;;  %v1199_v18 = vcombine.high %v1183_v46, %v1183_v46 }
 0x41e   : > { %1095 = vbcast.lane.b32.xlu1 %v1089_v5, 264  ;;  %1091 = vbcast.lane.b32.xlu0 %v1089_v5, 256  ;;  %v5294_v47 = vrot.slane %v1200_v41, %v5208_v59 }
 0x41f   : > { %v5336_v24 = vrot.slane %v1199_v18, %v5208_v59 }
 0x422   : > { %1106 = vbcast.lane.b32.xlu1 %v1100_v7, 264  ;;  %1102 = vbcast.lane.b32.xlu0 %v1100_v7, 256 }
 0x426   : > { %1117 = vbcast.lane.b32.xlu1 %v1111_v9, 264  ;;  %1113 = vbcast.lane.b32.xlu0 %v1111_v9, 256 }
 0x42a   : > { %1128 = vbcast.lane.b32.xlu1 %v1122_v11, 264  ;;  %1124 = vbcast.lane.b32.xlu0 %v1122_v11, 256 }
 0x42e   : > { %1139 = vbcast.lane.b32.xlu1 %v1133_v14, 264  ;;  %1135 = vbcast.lane.b32.xlu0 %v1133_v14, 256 }
 0x432   : > { %1150 = vbcast.lane.b32.xlu1 %v5242_v16, 264  ;;  %1146 = vbcast.lane.b32.xlu0 %v5242_v16, 256 }
 0x436   : > { %1407 = vbcast.lane.b32.xlu1 %v1067_v3, 256  ;;  %1411 = vbcast.lane.b32.xlu0 %v1067_v3, 264 }
 0x43a   : > { %1418 = vbcast.lane.b32.xlu1 %v1078_v2, 256  ;;  %1429 = vbcast.lane.b32.xlu0 %v1089_v5, 256 }
 0x43e   : > { %1422 = vbcast.lane.b32.xlu1 %v1078_v2, 264  ;;  %1440 = vbcast.lane.b32.xlu0 %v1100_v7, 256  ;;  %v1197_v2 = vrot.slane %v1169_v50, %v5247_v20 }
 0x440   : > { %v1201_v30 = vcombine.high %v1197_v2, %v1197_v2 }
 0x442   : > { %1433 = vbcast.lane.b32.xlu1 %v1089_v5, 264  ;;  %1451 = vbcast.lane.b32.xlu0 %v1111_v9, 256  ;;  %v5345_v37 = vrot.slane %v1201_v30, %v5208_v59 }
 0x446   : > { %1444 = vbcast.lane.b32.xlu1 %v1100_v7, 264  ;;  %1462 = vbcast.lane.b32.xlu0 %v1122_v11, 256 }
 0x44a   : > { %1455 = vbcast.lane.b32.xlu1 %v1111_v9, 264  ;;  %1473 = vbcast.lane.b32.xlu0 %v1133_v14, 256 }
 0x44e   : > { %1466 = vbcast.lane.b32.xlu1 %v1122_v11, 264  ;;  %v5325_v11 = vrot.slane %v1197_v2, %v5208_v59 }
 0x452   : > { %1477 = vbcast.lane.b32.xlu1 %v1133_v14, 264 }
 0x488   : > { %v1081_v27 = vpop.permute.xlu1 %1080  ;;  %v1070_v28 = vpop.permute.xlu0 %1069 }
 0x489   : > { %vm1244_vm2 = vcmp.ge.f32.partialorder %v5254_v25, %v1081_v27  ;;  %vm1242_vm3 = vcmp.ge.f32.partialorder %v5257_v26, %v1070_v28 }
 0x48a   : > { %v5262_v29 = vsel %vm1242_vm3, 1.0, %v4735_v1  ;;  %v5269_v35 = vsel %vm1244_vm2, 1.0, %v4735_v1 }
 0x48b   : > { %v1290_v31 = vsel %vm655_vm1, %v5262_v29, 0.0  ;;  %v1296_v39 = vsel %vm655_vm1, %v5269_v35, 0.0  ;;  %v1338_v50 = vmul.f32 %v5262_v29, %v5257_v26  ;;  %v1340_v2 = vmul.f32 %v5269_v35, %v5254_v25 }
 0x48c   : > { %v1085_v33 = vpop.permute.xlu1 %1084  ;;  %1291 = vadd.xlane.f32.xlu0 %v1290_v31  ;;  %v1074_v34 = vpop.permute.xlu0 %1073 }
 0x48d   : > { %vm1245_vm4 = vcmp.ge.f32.partialorder %v5254_v25, %v1085_v33  ;;  %vm1243_vm5 = vcmp.ge.f32.partialorder %v5257_v26, %v1074_v34  ;;  %v1360_v29 = vsel %vm655_vm1, %v1340_v2, 0.0 }
 0x48e   : > { %v5274_v36 = vsel %vm1243_vm5, 1.0, %v4735_v1  ;;  %v5285_v44 = vsel %vm1245_vm4, 1.0, %v4735_v1 }
 0x48f   : > { %v1293_v40 = vsel %vm655_vm1, %v5274_v36, 0.0  ;;  %v1299_v48 = vsel %vm655_vm1, %v5285_v44, 0.0 }
 0x490   : > { %v1096_v42 = vpop.permute.xlu1 %1095  ;;  %1297 = vadd.xlane.f32.xlu0 %v1296_v39  ;;  %1294 = vadd.xlane.f32.xlu1 %v1293_v40  ;;  %v1092_v43 = vpop.permute.xlu0 %1091 }
 0x491   : > { %vm1247_vm6 = vcmp.ge.f32.partialorder %v5278_v38, %v1096_v42  ;;  %vm1246_vm7 = vcmp.ge.f32.partialorder %v5278_v38, %v1092_v43 }
 0x492   : > { %v5290_v45 = vsel %vm1246_vm7, 1.0, %v4735_v1  ;;  %v5301_v54 = vsel %vm1247_vm6, 1.0, %v4735_v1 }
 0x493   : > { %v1302_v49 = vsel %vm655_vm1, %v5290_v45, 0.0  ;;  %v1305_v61 = vsel %vm655_vm1, %v5301_v54, 0.0  ;;  %v1343_v35 = vmul.f32 %v5301_v54, %v5278_v38 }
 0x494   : > { %v1107_v51 = vpop.permute.xlu1 %1106  ;;  %1300 = vadd.xlane.f32.xlu0 %v1299_v48  ;;  %1303 = vadd.xlane.f32.xlu1 %v1302_v49  ;;  %v1103_v52 = vpop.permute.xlu0 %1102 }
 0x495   : > { %vm1249_vm8 = vcmp.ge.f32.partialorder %v5294_v47, %v1107_v51  ;;  %vm1248_vm9 = vcmp.ge.f32.partialorder %v5294_v47, %v1103_v52  ;;  %v1369_v18 = vsel %vm655_vm1, %v1343_v35, 0.0 }
 0x496   : > { %v5306_v56 = vsel %vm1248_vm9, 1.0, %v4735_v1  ;;  %v5317_v7 = vsel %vm1249_vm8, 1.0, %v4735_v1 }
 0x497   : > { %v1308_v63 = vsel %vm655_vm1, %v5306_v56, 0.0  ;;  %v1311_v14 = vsel %vm655_vm1, %v5317_v7, 0.0 }
 0x498   : > { %v1118_v3 = vpop.permute.xlu1 %1117  ;;  %1306 = vadd.xlane.f32.xlu0 %v1305_v61  ;;  %1309 = vadd.xlane.f32.xlu1 %v1308_v63  ;;  %v1114_v5 = vpop.permute.xlu0 %1113  ;;  %v1354_v61 = vsel %vm655_vm1, %v1338_v50, 0.0  ;;  %v1339_v63 = vmul.f32 %v5274_v36, %v5257_v26  ;;  %v1344_v36 = vmul.f32 %v5306_v56, %v5294_v47 }
 0x499   : > { %vm1251_vm10 = vcmp.ge.f32.partialorder %v5309_v58, %v1118_v3  ;;  %vm1250_vm11 = vcmp.ge.f32.partialorder %v5309_v58, %v1114_v5  ;;  %v1341_v5 = vmul.f32 %v5285_v44, %v5254_v25  ;;  %v1345_v44 = vmul.f32 %v5317_v7, %v5294_v47 }
 0x49a   : > { %v5322_v9 = vsel %vm1250_vm11, 1.0, %v4735_v1  ;;  %v3818_v22 = vsel %vm1251_vm10, 1.0, %v4735_v1  ;;  %v1357_v3 = vsel %vm655_vm1, %v1339_v63, 0.0  ;;  %v1372_v25 = vsel %vm655_vm1, %v1344_v36, 0.0 }
 0x49b   : > { %v1314_v17 = vsel %vm655_vm1, %v5322_v9, 0.0  ;;  %v1317_v27 = vsel %vm655_vm1, %v3818_v22, 0.0  ;;  %v1347_v54 = vmul.f32 %v3818_v22, %v5309_v58 }
 0x49c   : > { %v1129_v19 = vpop.permute.xlu1 %1128  ;;  %1312 = vadd.xlane.f32.xlu0 %v1311_v14  ;;  %1315 = vadd.xlane.f32.xlu1 %v1314_v17  ;;  %v1125_v21 = vpop.permute.xlu0 %1124  ;;  %v1342_v14 = vmul.f32 %v5290_v45, %v5278_v38  ;;  %v1363_v17 = vsel %vm655_vm1, %v1341_v5, 0.0  ;;  %v1346_v45 = vmul.f32 %v5322_v9, %v5309_v58  ;;  %v4737_v9 = vmov 0  }
 0x49d   : > { %vm1253_vm12 = vcmp.ge.f32.partialorder %v5325_v11, %v1129_v19  ;;  %vm1252_vm13 = vcmp.ge.f32.partialorder %v5325_v11, %v1125_v21  ;;  %v1375_v19 = vsel %vm655_vm1, %v1345_v44, 0.0  ;;  %v1381_v21 = vsel %vm655_vm1, %v1347_v54, 0.0  ;;  %4242 = vset.pattern.permute.xlu0 %v4737_v9  ;;  %4248 = vset.pattern.permute.xlu1 %v4737_v9 }
 0x49e   : > { %v3819_v23 = vsel %vm1252_vm13, 1.0, %v4735_v1  ;;  %v3820_v33 = vsel %vm1253_vm12, 1.0, %v4735_v1  ;;  %v1366_v26 = vsel %vm655_vm1, %v1342_v14, 0.0  ;;  %v1378_v38 = vsel %vm655_vm1, %v1346_v45, 0.0 }
 0x49f   : > { %v1320_v28 = vsel %vm655_vm1, %v3819_v23, 0.0  ;;  %v1323_v39 = vsel %vm655_vm1, %v3820_v33, 0.0  ;;  %v1348_v56 = vmul.f32 %v3819_v23, %v5325_v11  ;;  %v1349_v47 = vmul.f32 %v3820_v33, %v5325_v11 }
 0x4a0   : > { %v1140_v31 = vpop.permute.xlu1 %1139  ;;  %1318 = vadd.xlane.f32.xlu0 %v1317_v27  ;;  %1321 = vadd.xlane.f32.xlu1 %v1320_v28  ;;  %v1136_v32 = vpop.permute.xlu0 %1135 }
 0x4a1   : > { %vm1255_vm14 = vcmp.ge.f32.partialorder %v5336_v24, %v1140_v31  ;;  %vm1254_vm15 = vcmp.ge.f32.partialorder %v5336_v24, %v1136_v32  ;;  %v1384_v27 = vsel %vm655_vm1, %v1348_v56, 0.0  ;;  %v1387_v28 = vsel %vm655_vm1, %v1349_v47, 0.0 }
 0x4a2   : > { %v3821_v34 = vsel %vm1254_vm15, 1.0, %v4735_v1  ;;  %v3822_v43 = vsel %vm1255_vm14, 1.0, %v4735_v1 }
 0x4a3   : > { %v1326_v40 = vsel %vm655_vm1, %v3821_v34, 0.0  ;;  %v1329_v48 = vsel %vm655_vm1, %v3822_v43, 0.0  ;;  %v1350_v7 = vmul.f32 %v3821_v34, %v5336_v24  ;;  %v1351_v22 = vmul.f32 %v3822_v43, %v5336_v24 }
 0x4a4   : > { %v1151_v41 = vpop.permute.xlu1 %1150  ;;  %1324 = vadd.xlane.f32.xlu0 %v1323_v39  ;;  %1327 = vadd.xlane.f32.xlu1 %v1326_v40  ;;  %v1147_v42 = vpop.permute.xlu0 %1146 }
 0x4a5   : > { %vm1257_vm2 = vcmp.ge.f32.partialorder %v5345_v37, %v1151_v41  ;;  %vm1256_vm3 = vcmp.ge.f32.partialorder %v5345_v37, %v1147_v42  ;;  %v1390_v58 = vsel %vm655_vm1, %v1350_v7, 0.0  ;;  %v1393_v30 = vsel %vm655_vm1, %v1351_v22, 0.0 }
 0x4a6   : > { %v3823_v46 = vsel %vm1256_vm3, 1.0, %v4735_v1  ;;  %v3824_v51 = vsel %vm1257_vm2, 1.0, %v4735_v1 }
 0x4a7   : > { %v1332_v49 = vsel %vm655_vm1, %v3823_v46, 0.0  ;;  %v1335_v52 = vsel %vm655_vm1, %v3824_v51, 0.0  ;;  %v1352_v23 = vmul.f32 %v3823_v46, %v5345_v37  ;;  %v1353_v31 = vmul.f32 %v3824_v51, %v5345_v37 }
 0x4a8   : > { %1330 = vadd.xlane.f32.xlu0 %v1329_v48  ;;  %1333 = vadd.xlane.f32.xlu1 %v1332_v49  ;;  %v5400_v24 = vpop.permute.xlu1 %1407  ;;  %v5404_v34 = vpop.permute.xlu0 %1411 }
 0x4a9   : > { %v1396_v11 = vsel %vm655_vm1, %v1352_v23, 0.0  ;;  %v1399_v32 = vsel %vm655_vm1, %v1353_v31, 0.0 }
 0x4ac   : > { %1336 = vadd.xlane.f32.xlu0 %v1335_v52  ;;  %1355 = vadd.xlane.f32.xlu1 %v1354_v61  ;;  %v5402_v33 = vpop.permute.xlu1 %1418  ;;  %v5408_v40 = vpop.permute.xlu0 %1429 }
 0x4b0   : > { %1358 = vadd.xlane.f32.xlu0 %v1357_v3  ;;  %1361 = vadd.xlane.f32.xlu1 %v1360_v29  ;;  %v5406_v39 = vpop.permute.xlu1 %1422  ;;  %v5412_v41 = vpop.permute.xlu0 %1440 }
 0x4b4   : > { %1364 = vadd.xlane.f32.xlu0 %v1363_v17  ;;  %1367 = vadd.xlane.f32.xlu1 %v1366_v26  ;;  %v5410_v37 = vpop.permute.xlu1 %1433  ;;  %v5416_v43 = vpop.permute.xlu0 %1451 }
 0x4b8   : > { %1370 = vadd.xlane.f32.xlu0 %v1369_v18  ;;  %1373 = vadd.xlane.f32.xlu1 %v1372_v25  ;;  %v5414_v42 = vpop.permute.xlu1 %1444 }
 0x4bc   : > { %1376 = vadd.xlane.f32.xlu0 %v1375_v19  ;;  %1379 = vadd.xlane.f32.xlu1 %v1378_v38  ;;  %v5418_v46 = vpop.permute.xlu1 %1455 }
 0x4c0   : > { %1382 = vadd.xlane.f32.xlu0 %v1381_v21  ;;  %1385 = vadd.xlane.f32.xlu1 %v1384_v27  ;;  %v5422_v48 = vpop.permute.xlu1 %1466 }
 0x4c4   : > { %1388 = vadd.xlane.f32.xlu0 %v1387_v28  ;;  %1391 = vadd.xlane.f32.xlu1 %v1390_v58  ;;  %v5426_v50 = vpop.permute.xlu1 %1477 }
 0x4c8   : > { %1394 = vadd.xlane.f32.xlu0 %v1393_v30  ;;  %1397 = vadd.xlane.f32.xlu1 %v1396_v11 }
 0x4cc   : > { %1400 = vadd.xlane.f32.xlu0 %v1399_v32 }
 0x4d9   : > { %1488 = vbcast.lane.b32.xlu1 %v5242_v16, 264 }
 0x4e2   : > { %1484 = vbcast.lane.b32.xlu0 %v5242_v16, 256  ;;  %v5420_v16 = vpop.permute.xlu0 %1462 }
 0x4e6   : > { %v5424_v49 = vpop.permute.xlu0 %1473 }
 0x519   : > { %v1292_v51 = vpop.xlane.xlu0 %1291 }
 0x51a   : > { %v1506_v44 = vmul.f32 %v5400_v24, %v1292_v51 }
 0x51c   : > { %v1522_v54 = vadd.f32 1.0, %v1506_v44 }
 0x51d   : > { %v1295_v52 = vpop.xlane.xlu1 %1294  ;;  %v1298_v61 = vpop.xlane.xlu0 %1297 }
 0x51e   : > { %v1507_v45 = vmul.f32 %v5404_v34, %v1295_v52  ;;  %v1508_v56 = vmul.f32 %v5402_v33, %v1298_v61 }
 0x520   : > { %v1523_v21 = vadd.f32 1.0, %v1507_v45  ;;  %v1524_v9 = vadd.f32 1.0, %v1508_v56 }
 0x521   : > { %v1304_v63 = vpop.xlane.xlu1 %1303  ;;  %v1301_v2 = vpop.xlane.xlu0 %1300 }
 0x522   : > { %v1509_v27 = vmul.f32 %v5406_v39, %v1301_v2  ;;  %v1510_v28 = vmul.f32 %v5408_v40, %v1304_v63 }
 0x524   : > { %v1525_v23 = vadd.f32 1.0, %v1509_v27  ;;  %v1526_v51 = vadd.f32 1.0, %v1510_v28 }
 0x525   : > { %v1310_v3 = vpop.xlane.xlu1 %1309  ;;  %v1307_v29 = vpop.xlane.xlu0 %1306 }
 0x526   : > { %v1511_v30 = vmul.f32 %v5410_v37, %v1307_v29  ;;  %v1512_v52 = vmul.f32 %v5412_v41, %v1310_v3 }
 0x528   : > { %v1527_v2 = vadd.f32 1.0, %v1511_v30 }
 0x529   : > { %v1316_v5 = vpop.xlane.xlu1 %1315  ;;  %v1313_v14 = vpop.xlane.xlu0 %1312 }
 0x52a   : > { %v1513_v29 = vmul.f32 %v5414_v42, %v1313_v14  ;;  %v1514_v3 = vmul.f32 %v5416_v43, %v1316_v5 }
 0x52c   : > { %v1529_v27 = vadd.f32 1.0, %v1513_v29  ;;  %v1530_v28 = vadd.f32 1.0, %v1514_v3 }
 0x52d   : > { %v1322_v17 = vpop.xlane.xlu1 %1321  ;;  %v1319_v26 = vpop.xlane.xlu0 %1318 }
 0x52e   : > { %v1515_v14 = vmul.f32 %v5418_v46, %v1319_v26  ;;  %v1516_v5 = vmul.f32 %v5420_v16, %v1322_v17 }
 0x531   : > { %v5428_v35 = vpop.xlane.xlu1 %1327  ;;  %v1325_v36 = vpop.xlane.xlu0 %1324 }
 0x535   : > { %v5430_v18 = vpop.xlane.xlu1 %1333  ;;  %v5432_v25 = vpop.xlane.xlu0 %1330 }
 0x539   : > { %v1356_v19 = vpop.xlane.xlu1 %1355  ;;  %v5436_v38 = vpop.xlane.xlu0 %1336 }
 0x53a   : > { %vm1538_vm4 = vcmp.gt.f32.partialorder %v1522_v54, %v1356_v19  ;;  %v1528_v54 = vadd.f32 1.0, %v1512_v52  ;;  %v1532_v52 = vadd.f32 1.0, %v1516_v5 }
 0x53b   : > { %v5442_v58 = vsel %vm1538_vm4, 1.0, %v4735_v1 }
 0x53d   : > { %v1362_v47 = vpop.xlane.xlu1 %1361  ;;  %v1359_v7 = vpop.xlane.xlu0 %1358 }
 0x53e   : > { %vm1539_vm5 = vcmp.gt.f32.partialorder %v1523_v21, %v1359_v7  ;;  %vm1540_vm6 = vcmp.gt.f32.partialorder %v1524_v9, %v1362_v47 }
 0x53f   : > { %v5445_v22 = vsel %vm1539_vm5, 1.0, %v4735_v1  ;;  %v5452_v61 = vsel %vm1540_vm6, 1.0, %v4735_v1  ;;  %vm1677_vm6 = vcmask 130112  }
 0x540   : > { %v4243_v11 = vpack.i.bf16 %v5445_v22, %v5442_v58 }
 0x541   : > { %v1368_v31 = vpop.xlane.xlu1 %1367  ;;  %v1365_v32 = vpop.xlane.xlu0 %1364 }
 0x542   : > { %vm1541_vm7 = vcmp.gt.f32.partialorder %v1525_v23, %v1365_v32  ;;  %4244 = vperm.xlu0 %4242, %v4243_v11   ;;  %vm1542_vm8 = vcmp.gt.f32.partialorder %v1526_v51, %v1368_v31  ;;  %v1531_v11 = vadd.f32 1.0, %v1515_v14  ;;  %v1517_v31 = vmul.f32 %v5422_v48, %v1325_v36 }
 0x543   : > { %v5455_v63 = vsel %vm1541_vm7, 1.0, %v4735_v1  ;;  %v5462_v56 = vsel %vm1542_vm8, 1.0, %v4735_v1  ;;  %vm1742_vm7 = vcmask 1041409   ;;  %vm1744_vm8 = vcmask 1042434  }
 0x544   : > { %v4249_v44 = vpack.i.bf16 %v5455_v63, %v5452_v61 }
 0x545   : > { %v1374_v45 = vpop.xlane.xlu1 %1373  ;;  %v1371_v19 = vpop.xlane.xlu0 %1370 }
 0x546   : > { %vm1543_vm9 = vcmp.gt.f32.partialorder %v1527_v2, %v1371_v19  ;;  %4250 = vperm.xlu1 %4248, %v4249_v44   ;;  %vm1544_vm10 = vcmp.gt.f32.partialorder %v1528_v54, %v1374_v45  ;;  %v1518_v2 = vmul.f32 %v5424_v49, %v5428_v35  ;;  %v1533_v44 = vadd.f32 1.0, %v1517_v31 }
 0x547   : > { %v5465_v21 = vsel %vm1543_vm9, 1.0, %v4735_v1  ;;  %v3831_v23 = vsel %vm1544_vm10, 1.0, %v4735_v1  ;;  %v1519_v45 = vmul.f32 %v5426_v50, %v5432_v25  ;;  %vm1746_vm9 = vcmask 1043459  }
 0x548   : > { %v4254_v47 = vpack.i.bf16 %v5465_v21, %v5462_v56  ;;  %v1534_v3 = vadd.f32 1.0, %v1518_v2  ;;  %vm1748_vm10 = vcmask 1044484  }
 0x549   : > { %v1380_v7 = vpop.xlane.xlu1 %1379  ;;  %v1377_v9 = vpop.xlane.xlu0 %1376  ;;  %v1535_v14 = vadd.f32 1.0, %v1519_v45 }
 0x54a   : > { %vm1545_vm11 = vcmp.gt.f32.partialorder %v1529_v27, %v1377_v9  ;;  %4255 = vperm.xlu1 %4248, %v4254_v47   ;;  %vm1546_vm12 = vcmp.gt.f32.partialorder %v1530_v28, %v1380_v7 }
 0x54b   : > { %v5473_v30 = vsel %vm1545_vm11, 1.0, %v4735_v1  ;;  %v3833_v17 = vsel %vm1546_vm12, 1.0, %v4735_v1  ;;  %vm1750_vm11 = vcmask 1045509   ;;  %vm1752_vm12 = vcmask 1046534  }
 0x54c   : > { %v4259_v26 = vpack.i.bf16 %v5473_v30, %v3831_v23 }
 0x54d   : > { %v1386_v32 = vpop.xlane.xlu1 %1385  ;;  %v1383_v51 = vpop.xlane.xlu0 %1382 }
 0x54e   : > { %vm1547_vm13 = vcmp.gt.f32.partialorder %v1531_v11, %v1383_v51  ;;  %4260 = vperm.xlu0 %4242, %v4259_v26   ;;  %vm1548_vm14 = vcmp.gt.f32.partialorder %v1532_v52, %v1386_v32  ;;  %v1586_v32 = vmul.f32 %v5442_v58, %v5400_v24  ;;  %v1592_v58 = vmul.f32 %v3831_v23, %v5412_v41 }
 0x54f   : > { %v3834_v29 = vsel %vm1547_vm13, 1.0, %v4735_v1  ;;  %v3835_v27 = vsel %vm1548_vm14, 1.0, %v4735_v1  ;;  %vm1754_vm13 = vcmask 1047559  }
 0x550   : > { %v4264_v36 = vpack.i.bf16 %v3834_v29, %v3833_v17 }
 0x551   : > { %v1392_v19 = vpop.xlane.xlu1 %1391  ;;  %v1389_v54 = vpop.xlane.xlu0 %1388 }
 0x552   : > { %vm1549_vm15 = vcmp.gt.f32.partialorder %v1533_v44, %v1389_v54  ;;  %4265 = vperm.xlu1 %4248, %v4264_v36   ;;  %vm1550_vm2 = vcmp.gt.f32.partialorder %v1534_v3, %v1392_v19  ;;  %v1588_v44 = vmul.f32 %v5452_v61, %v5402_v33  ;;  %v1590_v19 = vmul.f32 %v5462_v56, %v5408_v40 }
 0x553   : > { %v3836_v35 = vsel %vm1549_vm15, 1.0, %v4735_v1  ;;  %v3837_v25 = vsel %vm1550_vm2, 1.0, %v4735_v1  ;;  %v1589_v33 = vmul.f32 %v5455_v63, %v5406_v39  ;;  %v1594_v61 = vmul.f32 %v3833_v17, %v5416_v43 }
 0x554   : > { %v4269_v47 = vpack.i.bf16 %v3836_v35, %v3835_v27  ;;  %v1591_v40 = vmul.f32 %v5465_v21, %v5410_v37  ;;  %v1596_v56 = vmul.f32 %v3835_v27, %v5420_v16  ;;  %v1598_v41 = vmul.f32 %v3837_v25, %v5424_v49 }
 0x555   : > { %v1398_v7 = vpop.xlane.xlu1 %1397  ;;  %v1395_v9 = vpop.xlane.xlu0 %1394  ;;  %v1595_v39 = vmul.f32 %v3834_v29, %v5418_v46  ;;  %v1597_v43 = vmul.f32 %v3836_v35, %v5422_v48 }
 0x556   : > { %vm1551_vm3 = vcmp.gt.f32.partialorder %v1535_v14, %v1395_v9  ;;  %4270 = vperm.xlu0 %4242, %v4269_v47  }
 0x557   : > { %v3838_v28 = vsel %vm1551_vm3, 1.0, %v4735_v1 }
 0x558   : > { %v4274_v5 = vpack.i.bf16 %v3838_v28, %v3837_v25  ;;  %v1599_v37 = vmul.f32 %v3838_v28, %v5426_v50 }
 0x559   : > { %v1489_v11 = vpop.permute.xlu1 %1488  ;;  %v1401_v31 = vpop.xlane.xlu0 %1400 }
 0x55a   : > { %v1521_v26 = vmul.f32 %v1489_v11, %v5436_v38  ;;  %4275 = vperm.xlu1 %4248, %v4274_v5  }
 0x55c   : > { %v1537_v51 = vadd.f32 1.0, %v1521_v26 }
 0x55d   : > { %v1485_v52 = vpop.permute.xlu0 %1484 }
 0x55e   : > { %v1520_v2 = vmul.f32 %v1485_v52, %v5430_v18  ;;  %1619 = vperm.xlu1 %4248, %v1586_v32   ;;  %vm1553_vm4 = vcmp.gt.f32.partialorder %v1537_v51, %v1401_v31  ;;  %v1587_v18 = vmul.f32 %v5445_v22, %v5404_v34  ;;  %v1593_v34 = vmul.f32 %v5473_v30, %v5414_v42 }
 0x55f   : > { %v3840_v36 = vsel %vm1553_vm4, 1.0, %v4735_v1 }
 0x560   : > { %v1536_v45 = vadd.f32 1.0, %v1520_v2  ;;  %v1601_v16 = vmul.f32 %v3840_v36, %v1489_v11 }
 0x562   : > { %vm1552_vm5 = vcmp.gt.f32.partialorder %v1536_v45, %v1398_v7  ;;  %1625 = vperm.xlu1 %4248, %v1588_v44  }
 0x563   : > { %v3839_v38 = vsel %vm1552_vm5, 1.0, %v4735_v1 }
 0x564   : > { %v4279_v24 = vpack.i.bf16 %v3840_v36, %v3839_v38  ;;  %v1600_v22 = vmul.f32 %v3839_v38, %v1485_v52 }
 0x566   : > { %1631 = vperm.xlu1 %4248, %v1590_v19   ;;  %4280 = vperm.xlu0 %4242, %v4279_v24  }
 0x56a   : > { %1637 = vperm.xlu1 %4248, %v1592_v58   ;;  %1622 = vperm.xlu0 %4242, %v1587_v18  }
 0x56e   : > { %1643 = vperm.xlu1 %4248, %v1594_v61   ;;  %1628 = vperm.xlu0 %4242, %v1589_v33  }
 0x572   : > { %1649 = vperm.xlu1 %4248, %v1596_v56   ;;  %1634 = vperm.xlu0 %4242, %v1591_v40  }
 0x576   : > { %1655 = vperm.xlu1 %4248, %v1598_v41   ;;  %1640 = vperm.xlu0 %4242, %v1593_v34  }
 0x57a   : > { %1646 = vperm.xlu0 %4242, %v1595_v39   ;;  %1661 = vperm.xlu1 %4248, %v1600_v22  }
 0x57e   : > { %1652 = vperm.xlu0 %4242, %v1597_v43  }
 0x582   : > { %1658 = vperm.xlu0 %4242, %v1599_v37  }
 0x586   : > { %1664 = vperm.xlu0 %4242, %v1601_v16  }
 0x5c1   : > { %v4245_v42 = vpop.permute.xlu0 %4244 }
 0x5c2   : > { %v4247_v27 = vunpack.i.h.bf16 %v4245_v42  ;;  %v4246_v14 = vunpack.i.l.bf16 %v4245_v42 }
 0x5c4   : > { %v1831_v51 = vrot.slane %v4247_v27, %v5205_v57  ;;  %v1827_v52 = vrot.slane %v4246_v14, %v5202_v55 }
 0x5c5   : > { %v4251_v63 = vpop.permute.xlu1 %4250 }
 0x5c6   : > { %v4253_v17 = vunpack.i.h.bf16 %v4251_v63  ;;  %v4252_v54 = vunpack.i.l.bf16 %v4251_v63  ;;  %v1832_v40 = vsel %vm1677_vm6, %v1831_v51, %v1827_v52 }
 0x5c8   : > { %v1840_v9 = vrot.slane %v4253_v17, %v5205_v57  ;;  %v1836_v25 = vrot.slane %v4252_v54, %v5202_v55 }
 0x5c9   : > { %v4256_v21 = vpop.permute.xlu1 %4255 }
 0x5ca   : > { %v4258_v46 = vunpack.i.h.bf16 %v4256_v21  ;;  %v4257_v29 = vunpack.i.l.bf16 %v4256_v21  ;;  %v1841_v19 = vsel %vm1677_vm6, %v1840_v9, %v1836_v25 }
 0x5cb   : > { %v1896_v34 = vsel %vm1742_vm7, %v1841_v19, %v1832_v40 }
 0x5cc   : > { %v1849_v11 = vrot.slane %v4258_v46, %v5205_v57  ;;  %v1845_v31 = vrot.slane %v4257_v29, %v5202_v55 }
 0x5cd   : > { %v4261_v49 = vpop.permute.xlu0 %4260 }
 0x5ce   : > { %v4263_v48 = vunpack.i.h.bf16 %v4261_v49  ;;  %v4262_v35 = vunpack.i.l.bf16 %v4261_v49  ;;  %v1850_v58 = vsel %vm1677_vm6, %v1849_v11, %v1845_v31 }
 0x5cf   : > { %v1897_v43 = vsel %vm1744_vm8, %v1850_v58, %v1896_v34 }
 0x5d0   : > { %v1858_v2 = vrot.slane %v4263_v48, %v5205_v57  ;;  %v1854_v44 = vrot.slane %v4262_v35, %v5202_v55 }
 0x5d1   : > { %v4266_v23 = vpop.permute.xlu1 %4265 }
 0x5d2   : > { %v4268_v47 = vunpack.i.h.bf16 %v4266_v23  ;;  %v4267_v50 = vunpack.i.l.bf16 %v4266_v23  ;;  %v1859_v56 = vsel %vm1677_vm6, %v1858_v2, %v1854_v44 }
 0x5d3   : > { %v1898_v42 = vsel %vm1746_vm9, %v1859_v56, %v1897_v43 }
 0x5d4   : > { %v1867_v45 = vrot.slane %v4268_v47, %v5205_v57  ;;  %v1863_v36 = vrot.slane %v4267_v50, %v5202_v55 }
 0x5d5   : > { %v4271_v3 = vpop.permute.xlu0 %4270 }
 0x5d6   : > { %v4273_v28 = vunpack.i.h.bf16 %v4271_v3  ;;  %v4272_v5 = vunpack.i.l.bf16 %v4271_v3  ;;  %v1868_v41 = vsel %vm1677_vm6, %v1867_v45, %v1863_v36 }
 0x5d8   : > { %v1876_v24 = vrot.slane %v4273_v28, %v5205_v57  ;;  %v1872_v18 = vrot.slane %v4272_v5, %v5202_v55 }
 0x5d9   : > { %v4276_v30 = vpop.permute.xlu1 %4275 }
 0x5da   : > { %v4278_v26 = vunpack.i.h.bf16 %v4276_v30  ;;  %v4277_v32 = vunpack.i.l.bf16 %v4276_v30  ;;  %v1877_v63 = vsel %vm1677_vm6, %v1876_v24, %v1872_v18  ;;  %v1899_v30 = vsel %vm1748_vm10, %v1868_v41, %v1898_v42 }
 0x5db   : > { %v1900_v54 = vsel %vm1750_vm11, %v1877_v63, %v1899_v30 }
 0x5dc   : > { %v1885_v33 = vrot.slane %v4278_v26, %v5205_v57  ;;  %v1881_v61 = vrot.slane %v4277_v32, %v5202_v55 }
 0x5dd   : > { %v5512_v7 = vpop.permute.xlu1 %1619 }
 0x5de   : > { %v1886_v21 = vsel %vm1677_vm6, %v1885_v33, %v1881_v61  ;;  %v1671_v44 = vrot.slane %v5512_v7, %v5202_v55 }
 0x5df   : > { %v1901_v29 = vsel %vm1752_vm12, %v1886_v21, %v1900_v54 }
 0x5e1   : > { %v1626_v38 = vpop.permute.xlu1 %1625 }
 0x5e2   : > { %v1682_v26 = vrot.slane %v1626_v38, %v5202_v55 }
 0x5e5   : > { %v1632_v39 = vpop.permute.xlu1 %1631  ;;  %v4281_v22 = vpop.permute.xlu0 %4280 }
 0x5e6   : > { %v4283_v37 = vunpack.i.h.bf16 %v4281_v22  ;;  %v4282_v16 = vunpack.i.l.bf16 %v4281_v22  ;;  %v1691_v52 = vrot.slane %v1632_v39, %v5202_v55 }
 0x5e8   : > { %v1894_v23 = vrot.slane %v4283_v37, %v5205_v57  ;;  %v1890_v49 = vrot.slane %v4282_v16, %v5202_v55 }
 0x5e9   : > { %v1623_v17 = vpop.permute.xlu0 %1622  ;;  %v1638_v3 = vpop.permute.xlu1 %1637 }
 0x5ea   : > { %v1895_v46 = vsel %vm1677_vm6, %v1894_v23, %v1890_v49  ;;  %v1676_v32 = vrot.slane %v1623_v17, %v5205_v57  ;;  %v1700_v45 = vrot.slane %v1638_v3, %v5202_v55  ;;  %v1915_v3 = vld [vmem:[#allocation6 + $0x10] sm:$0xff] }
 0x5eb   : > { %v1902_v27 = vsel %vm1754_vm13, %v1895_v46, %v1901_v29  ;;  %v1918_v46 = vld [vmem:[#allocation7 + $0x10] sm:$0xff]  ;;  %v1919_v29 = vld [vmem:[#allocation7 + $0x18] sm:$0xff] }
 0x5ec   : > { %v1904_v14 = vsel %vm655_vm1, %v1902_v27, 0.0  ;;  %v1678_v58 = vsel %vm1677_vm6, %v1676_v32, %v1671_v44  ;;  %v4067_v27 = vpack.c.bf16 %v1919_v29, %v1918_v46  ;;  %v2087_v32 = vld [vmem:[#allocation12 + $0x10] sm:$0xff] }
 0x5ed   : > { %v1629_v48 = vpop.permute.xlu0 %1628  ;;  %1905 = vadd.xlane.f32.xlu1 %v1904_v14  ;;  %v1644_v35 = vpop.permute.xlu1 %1643  ;;  %v1916_v14 = vld [vmem:[#allocation6 + $0x18] sm:$0xff] }
 0x5ee   : > { %v1686_v28 = vrot.slane %v1629_v48, %v5205_v57  ;;  %v1709_v24 = vrot.slane %v1644_v35, %v5202_v55  ;;  %v4064_v48 = vpack.c.bf16 %v1916_v14, %v1915_v3  ;;  %4068 = vmatpush3.bf16.msra.mxu0 %v4067_v27  ;;  %v3852_v14 = vld [vmem:[#allocation18 + $0x1] ss:$0 sm:$0xff] }
 0x5ef   : > { %4072 = vmatprep.subr.bf16.mxu0 %v4733_v0 }
 0x5f0   : > { %v1687_v36 = vsel %vm1677_vm6, %v1686_v28, %v1682_v26  ;;  %4065 = vmatpush3.bf16.msra.mxu1 %v4064_v48  ;;  %v2091_v26 = vld [vmem:[#allocation13 + $0x18] sm:$0xff] }
 0x5f1   : > { %v1635_v47 = vpop.permute.xlu0 %1634  ;;  %v1650_v9 = vpop.permute.xlu1 %1649  ;;  %v1743_v7 = vsel %vm1742_vm7, %v1687_v36, %v1678_v58  ;;  %4069 = vmatprep.subr.bf16.mxu1 %v4733_v0 }
 0x5f2   : > { %v1695_v5 = vrot.slane %v1635_v47, %v5205_v57  ;;  %v1718_v33 = vrot.slane %v1650_v9, %v5202_v55 }
 0x5f4   : > { %v1696_v38 = vsel %vm1677_vm6, %v1695_v5, %v1691_v52 }
 0x5f5   : > { %v1641_v50 = vpop.permute.xlu0 %1640  ;;  %v1656_v11 = vpop.permute.xlu1 %1655  ;;  %v1745_v39 = vsel %vm1744_vm8, %v1696_v38, %v1743_v7 }
 0x5f6   : > { %v1704_v51 = vrot.slane %v1641_v50, %v5205_v57  ;;  %v1727_v56 = vrot.slane %v1656_v11, %v5202_v55 }
 0x5f8   : > { %v1705_v61 = vsel %vm1677_vm6, %v1704_v51, %v1700_v45 }
 0x5f9   : > { %v1647_v25 = vpop.permute.xlu0 %1646  ;;  %v1662_v34 = vpop.permute.xlu1 %1661  ;;  %v1747_v43 = vsel %vm1746_vm9, %v1705_v61, %v1745_v39  ;;  %v3842_v61 = vld [vmem:[#allocation9 + $0x1] ss:$0 sm:$0xff] }
 0x5fa   : > { %v1713_v2 = vrot.slane %v1647_v25, %v5205_v57  ;;  %v1736_v63 = vrot.slane %v1662_v34, %v5202_v55  ;;  %v3850_v34 = vld [vmem:[%s6057_s14 + $0x10] sm:$0xff] }
 0x5fc   : > { %v1714_v41 = vsel %vm1677_vm6, %v1713_v2, %v1709_v24  ;;  %v3844_v2 = vld [vmem:[#allocation10 + $0x1] ss:$0 sm:$0xff] }
 0x5fd   : > { %v1653_v31 = vpop.permute.xlu0 %1652  ;;  %v1749_v42 = vsel %vm1748_vm10, %v1714_v41, %v1747_v43  ;;  %v3851_v41 = vld [vmem:[%s6057_s14 + $0x18] sm:$0xff] }
 0x5fe   : > { %v1722_v19 = vrot.slane %v1653_v31, %v5205_v57  ;;  %v2090_v31 = vld [vmem:[#allocation13 + $0x10] sm:$0xff]  ;;  %v4076_v39 = vpack.c.bf16 %v3851_v41, %v3850_v34 }
 0x5ff   : > { %v4073_v51 = vpack.c.bf16 %v2091_v26, %v2090_v31 }
 0x600   : > { %v1723_v22 = vsel %vm1677_vm6, %v1722_v19, %v1718_v33 }
 0x601   : > { %v1659_v18 = vpop.permute.xlu0 %1658  ;;  %v1751_v23 = vsel %vm1750_vm11, %v1723_v22, %v1749_v42  ;;  %v3848_v22 = vld [vmem:[#allocation16 + $0x1] ss:$0 sm:$0xff] }
 0x602   : > { %v1731_v40 = vrot.slane %v1659_v18, %v5205_v57 }
 0x604   : > { %v1732_v37 = vsel %vm1677_vm6, %v1731_v40, %v1727_v56 }
 0x605   : > { %v1665_v16 = vpop.permute.xlu0 %1664  ;;  %v1753_v30 = vsel %vm1752_vm12, %v1732_v37, %v1751_v23 }
 0x606   : > { %v1740_v21 = vrot.slane %v1665_v16, %v5205_v57 }
 0x608   : > { %v1741_v49 = vsel %vm1677_vm6, %v1740_v21, %v1736_v63 }
 0x609   : > { %v1755_v17 = vsel %vm1754_vm13, %v1741_v49, %v1753_v30 }
 0x60a   : > { %v1757_v54 = vsel %vm655_vm1, %v1755_v17, 0.0  ;;  %v3846_v17 = vld [vmem:[#allocation15 + $0x1] ss:$0 sm:$0xff] }
 0x60b   : > { %1758 = vadd.xlane.f32.xlu0 %v1757_v54 }
 0x67a   : > { %v1906_v35 = vpop.xlane.xlu1 %1905 }
 0x67b   : > { %4332 = vrcp.f32 %v1906_v35 }
 0x685   : > { %v4333_v9 = vpop.eup %4332 }
 0x698   : > { %v1759_v47 = vpop.xlane.xlu0 %1758 }
 0x699   : > { %v3841_v50 = vadd.f32 -1.0, %v1759_v47 }
 0x69b   : > { %v1909_v25 = vmul.f32 %v4333_v9, %v3841_v50 }
 0x69d   : > { %v1910_v28 = vsub.f32 %v5211_v62, %v1909_v25  ;;  %v2088_v62 = vld [vmem:[#allocation12 + $0x18] sm:$0xff] }
 0x69e   : > { %v4070_v52 = vpack.c.bf16 %v2088_v62, %v2087_v32 }
 0x69f   : > { %v5582_v5 = vmax.f32 %v1910_v28, 0.0 }
 0x6a1   : > { %v1913_v11 = vmul.f32 %v5582_v5, %v5169_v12  ;;  %v1912_v35 = vsub.f32 1.3, %v5582_v5 }
 0x6a3   : > { %3983 = vmatmul.mubr.msk.f32.vlgmr.msra.gmra.mrb[4].mxu1 %vm655_vm1, %v1913_v11  ;;  %3990 = vmatmul.mubr.msk.f32.vlgmr.msra.gmra.mrb[6].mxu0 %vm655_vm1, %v1913_v11 }
 0x6a4   : > { %3996 = vmatprep.mubr.msk.f32.mxu1 %vm4734_vm0, %v4735_v1  ;;  %4003 = vmatprep.mubr.msk.f32.mxu0 %vm4734_vm0, %v4735_v1 }
 0x6a5   : > { %4074 = vmatpush3.bf16.msra.mxu0 %v4073_v51  ;;  %4071 = vmatpush3.bf16.msra.mxu1 %v4070_v52 }
 0x6a6   : > { %4078 = vmatprep.subr.bf16.mxu0 %v4733_v0  ;;  %4075 = vmatprep.subr.bf16.mxu1 %v4733_v0 }
 0x776   : > { %v1999_v44 = vpop.f32.mrb[4].mxu1  ;;  %v2075_v45 = vpop.f32.mrb[6].mxu0 }
 0x777   : > { %v2076_v36 = vadd.f32 %v3844_v2, %v2075_v45  ;;  %v3984_v19 = vpop.f32.mrb[5].mxu1  ;;  %v3991_v24 = vpop.f32.mrb[7].mxu0  ;;  %v2000_v40 = vadd.f32 %v3842_v61, %v1999_v44 }
 0x779   : > { %v2079_v38 = vsub.f32 0.0, %v2076_v36 }
 0x77b   : > { %v2080_v18 = vmul.f32 1.442695, %v2079_v38 }
 0x77d   : > { %4334 = vpow2.f32 %v2080_v18 }
 0x787   : > { %v4335_v58 = vpop.eup %4334 }
 0x788   : > { %v2082_v33 = vadd.f32 1.0, %v4335_v58 }
 0x78a   : > { %4336 = vrcp.f32 %v2082_v33 }
 0x794   : > { %v4337_v7 = vpop.eup %4336 }
 0x795   : > { %v2085_v56 = vmul.f32 %v4337_v7, %v2000_v40 }
 0x797   : > { %3997 = vmatmul.mubr.msk.f32.vlgmr.msra.gmra.mrb[6].mxu1 %vm655_vm1, %v2085_v56  ;;  %4004 = vmatmul.mubr.msk.f32.vlgmr.msra.gmra.mrb[8].mxu0 %vm655_vm1, %v2085_v56 }
 0x798   : > { %4010 = vmatprep.mubr.msk.f32.mxu1 %vm4734_vm0, %v4735_v1  ;;  %4017 = vmatprep.mubr.msk.f32.mxu0 %vm4734_vm0, %v4735_v1 }
 0x799   : > { %4077 = vmatpush3.bf16.msra.mxu1 %v4076_v39 }
 0x79a   : > { %4081 = vmatprep.subr.bf16.mxu1 %v4733_v0 }
 0x86a   : > { %v2171_v43 = vpop.f32.mrb[6].mxu1  ;;  %v2247_v37 = vpop.f32.mrb[8].mxu0 }
 0x86b   : > { %v2248_v16 = vadd.f32 %v3848_v22, %v2247_v37  ;;  %v3998_v63 = vpop.f32.mrb[7].mxu1  ;;  %v4005_v21 = vpop.f32.mrb[9].mxu0  ;;  %v2172_v54 = vadd.f32 %v3846_v17, %v2171_v43 }
 0x86d   : > { %v2251_v42 = vsub.f32 0.0, %v2248_v16 }
 0x86f   : > { %v2252_v23 = vmul.f32 1.442695, %v2251_v42 }
 0x871   : > { %4338 = vpow2.f32 %v2252_v23 }
 0x87b   : > { %v4339_v49 = vpop.eup %4338 }
 0x87c   : > { %v2254_v30 = vadd.f32 1.0, %v4339_v49 }
 0x87e   : > { %4340 = vrcp.f32 %v2254_v30 }
 0x888   : > { %v4341_v46 = vpop.eup %4340 }
 0x889   : > { %v2257_v29 = vmul.f32 %v4341_v46, %v2172_v54 }
 0x88b   : > { %v2258_v3 = vadd.f32 %v2257_v29, %v2085_v56 }
 0x88d   : > { %v5607_v27 = vmul.f32 0.70710677, %v2258_v3 }
 0x88f   : > { %4011 = vmatmul.mubr.msk.f32.vlgmr.msra.gmra.mrb[8].mxu1 %vm655_vm1, %v5607_v27 }
 0x890   : > { %4024 = vmatprep.mubr.msk.f32.mxu1 %vm4734_vm0, %v4735_v1 }
 0x962   : > { %v2342_v48 = vpop.f32.mrb[8].mxu1 }
 0x963   : > { %v2343_v47 = vadd.f32 %v3852_v14, %v2342_v48  ;;  %v4012_v50 = vpop.f32.mrb[9].mxu1 }
 0x965   : > { %v5614_v9 = vmul.f32 %v2343_v47, %v1912_v35 }
 0x967   : > { %v2350_v25 = vrot.slane %v5614_v9, %v5208_v59  ;;  %v2361_v28 = vrot.slane %v5614_v9, %v1077_v60  ;;  %v2372_v11 = vrot.slane %v5614_v9, %v1088_v4  ;;  %v2383_v5 = vrot.slane %v5614_v9, %v1099_v6 }
 0x968   : > { %v2394_v31 = vrot.slane %v5614_v9, %v1110_v8  ;;  %v2405_v60 = vrot.slane %v5614_v9, %v1121_v10  ;;  %v2416_v4 = vrot.slane %v5614_v9, %v1132_v13  ;;  %v5639_v6 = vrot.slane %v5614_v9, %v1143_v15 }
 0x969   : > { %2356 = vbcast.lane.b32.xlu1 %v2350_v25, 264  ;;  %2352 = vbcast.lane.b32.xlu0 %v2350_v25, 256  ;;  %v2443_v53 = vrot.slane %v5614_v9, %v5247_v20  ;;  %v2436_v52 = vcombine.high %v5614_v9, %v5614_v9 }
 0x96b   : > { %v2459_v8 = vrot.slane %v2443_v53, %v5247_v20  ;;  %v2451_v10 = vcombine.high %v2443_v53, %v2443_v53  ;;  %v2450_v58 = vrot.slane %v2436_v52, %v5247_v20 }
 0x96d   : > { %2363 = vbcast.lane.b32.xlu1 %v2361_v28, 256  ;;  %2367 = vbcast.lane.b32.xlu0 %v2361_v28, 264  ;;  %v5647_v13 = vrot.slane %v2459_v8, %v5208_v59  ;;  %v2473_v15 = vrot.slane %v2451_v10, %v5247_v20  ;;  %v2481_v36 = vcombine.high %v2459_v8, %v2459_v8 }
 0x96e   : > { %v2466_v22 = vrot.slane %v2450_v58, %v5247_v20  ;;  %v2452_v63 = vcombine.high %v2450_v58, %v2450_v58 }
 0x96f   : > { %v5661_v2 = vrot.slane %v2473_v15, %v5208_v59  ;;  %v5677_v33 = vrot.slane %v2481_v36, %v5208_v59  ;;  %v2483_v7 = vcombine.high %v2473_v15, %v2473_v15 }
 0x970   : > { %v5708_v30 = vrot.slane %v2466_v22, %v5208_v59  ;;  %v2480_v46 = vrot.slane %v2452_v63, %v5247_v20  ;;  %v2482_v20 = vcombine.high %v2466_v22, %v2466_v22 }
 0x971   : > { %2374 = vbcast.lane.b32.xlu1 %v2372_v11, 256  ;;  %2378 = vbcast.lane.b32.xlu0 %v2372_v11, 264  ;;  %v5693_v43 = vrot.slane %v2483_v7, %v5208_v59 }
 0x972   : > { %v5720_v35 = vrot.slane %v2480_v46, %v5208_v59  ;;  %v2484_v53 = vcombine.high %v2480_v46, %v2480_v46 }
 0x975   : > { %2385 = vbcast.lane.b32.xlu1 %v2383_v5, 256  ;;  %2389 = vbcast.lane.b32.xlu0 %v2383_v5, 264 }
 0x979   : > { %2396 = vbcast.lane.b32.xlu1 %v2394_v31, 256  ;;  %2400 = vbcast.lane.b32.xlu0 %v2394_v31, 264 }
 0x97d   : > { %2407 = vbcast.lane.b32.xlu1 %v2405_v60, 256  ;;  %2411 = vbcast.lane.b32.xlu0 %v2405_v60, 264 }
 0x981   : > { %2418 = vbcast.lane.b32.xlu1 %v2416_v4, 256  ;;  %2422 = vbcast.lane.b32.xlu0 %v2416_v4, 264 }
 0x985   : > { %2429 = vbcast.lane.b32.xlu1 %v5639_v6, 256  ;;  %2433 = vbcast.lane.b32.xlu0 %v5639_v6, 264 }
 0x989   : > { %2694 = vbcast.lane.b32.xlu1 %v2350_v25, 264  ;;  %2690 = vbcast.lane.b32.xlu0 %v2350_v25, 256 }
 0x98d   : > { %2701 = vbcast.lane.b32.xlu1 %v2361_v28, 256  ;;  %2705 = vbcast.lane.b32.xlu0 %v2361_v28, 264 }
 0x991   : > { %2712 = vbcast.lane.b32.xlu1 %v2372_v11, 256  ;;  %2716 = vbcast.lane.b32.xlu0 %v2372_v11, 264 }
 0x995   : > { %2723 = vbcast.lane.b32.xlu1 %v2383_v5, 256  ;;  %2727 = vbcast.lane.b32.xlu0 %v2383_v5, 264 }
 0x999   : > { %2734 = vbcast.lane.b32.xlu1 %v2394_v31, 256  ;;  %2738 = vbcast.lane.b32.xlu0 %v2394_v31, 264  ;;  %v2512_v31 = vrot.slane %v2482_v20, %v5208_v59 }
 0x99d   : > { %2745 = vbcast.lane.b32.xlu1 %v2405_v60, 256  ;;  %2749 = vbcast.lane.b32.xlu0 %v2405_v60, 264 }
 0x9a1   : > { %2756 = vbcast.lane.b32.xlu1 %v2416_v4, 256  ;;  %2760 = vbcast.lane.b32.xlu0 %v2416_v4, 264 }
 0x9db   : > { %v2357_v26 = vpop.permute.xlu1 %2356  ;;  %v2353_v32 = vpop.permute.xlu0 %2352 }
 0x9dc   : > { %vm2526_vm14 = vcmp.ge.f32.partialorder %v5647_v13, %v2357_v26  ;;  %vm2525_vm15 = vcmp.ge.f32.partialorder %v5647_v13, %v2353_v32  ;;  %v2516_v32 = vrot.slane %v2484_v53, %v5208_v59 }
 0x9dd   : > { %v5653_v51 = vsel %vm2526_vm14, 1.0, %v4735_v1  ;;  %v5656_v62 = vsel %vm2525_vm15, 1.0, %v4735_v1 }
 0x9de   : > { %v2576_v44 = vsel %vm655_vm1, %v5653_v51, 0.0  ;;  %v2573_v45 = vsel %vm655_vm1, %v5656_v62, 0.0  ;;  %v2622_v58 = vmul.f32 %v5653_v51, %v5647_v13  ;;  %v2621_v59 = vmul.f32 %v5656_v62, %v5647_v13 }
 0x9df   : > { %v2364_v19 = vpop.permute.xlu1 %2363  ;;  %2577 = vadd.xlane.f32.xlu0 %v2576_v44  ;;  %2574 = vadd.xlane.f32.xlu1 %v2573_v45  ;;  %v2368_v24 = vpop.permute.xlu0 %2367 }
 0x9e0   : > { %vm2527_vm2 = vcmp.ge.f32.partialorder %v5661_v2, %v2364_v19  ;;  %vm2528_vm3 = vcmp.ge.f32.partialorder %v5661_v2, %v2368_v24  ;;  %v2640_v22 = vsel %vm655_vm1, %v2622_v58, 0.0 }
 0x9e1   : > { %v5670_v38 = vsel %vm2527_vm2, 1.0, %v4735_v1  ;;  %v5673_v18 = vsel %vm2528_vm3, 1.0, %v4735_v1 }
 0x9e2   : > { %v2579_v61 = vsel %vm655_vm1, %v5670_v38, 0.0  ;;  %v2582_v40 = vsel %vm655_vm1, %v5673_v18, 0.0  ;;  %v2623_v7 = vmul.f32 %v5670_v38, %v5661_v2 }
 0x9e3   : > { %v2375_v56 = vpop.permute.xlu1 %2374  ;;  %2580 = vadd.xlane.f32.xlu0 %v2579_v61  ;;  %2583 = vadd.xlane.f32.xlu1 %v2582_v40  ;;  %v2379_v34 = vpop.permute.xlu0 %2378 }
 0x9e4   : > { %vm2529_vm4 = vcmp.ge.f32.partialorder %v5677_v33, %v2375_v56  ;;  %vm2530_vm5 = vcmp.ge.f32.partialorder %v5677_v33, %v2379_v34  ;;  %v2624_v56 = vmul.f32 %v5673_v18, %v5661_v2  ;;  %v2637_v34 = vsel %vm655_vm1, %v2621_v59, 0.0 }
 0x9e5   : > { %v5686_v41 = vsel %vm2529_vm4, 1.0, %v4735_v1  ;;  %v5689_v39 = vsel %vm2530_vm5, 1.0, %v4735_v1  ;;  %v2643_v62 = vsel %vm655_vm1, %v2623_v7, 0.0 }
 0x9e6   : > { %v2585_v37 = vsel %vm655_vm1, %v5686_v41, 0.0  ;;  %v2588_v16 = vsel %vm655_vm1, %v5689_v39, 0.0  ;;  %v2625_v13 = vmul.f32 %v5686_v41, %v5677_v33  ;;  %v2626_v51 = vmul.f32 %v5689_v39, %v5677_v33 }
 0x9e7   : > { %v2386_v21 = vpop.permute.xlu1 %2385  ;;  %2586 = vadd.xlane.f32.xlu0 %v2585_v37  ;;  %2589 = vadd.xlane.f32.xlu1 %v2588_v16  ;;  %v2390_v42 = vpop.permute.xlu0 %2389  ;;  %v2646_v37 = vsel %vm655_vm1, %v2624_v56, 0.0 }
 0x9e8   : > { %vm2531_vm14 = vcmp.ge.f32.partialorder %v5693_v43, %v2386_v21  ;;  %vm2532_vm15 = vcmp.ge.f32.partialorder %v5693_v43, %v2390_v42  ;;  %v2649_v18 = vsel %vm655_vm1, %v2625_v13, 0.0  ;;  %v2652_v16 = vsel %vm655_vm1, %v2626_v51, 0.0 }
 0x9e9   : > { %v5702_v23 = vsel %vm2531_vm14, 1.0, %v4735_v1  ;;  %v5705_v49 = vsel %vm2532_vm15, 1.0, %v4735_v1 }
 0x9ea   : > { %v2591_v17 = vsel %vm655_vm1, %v5702_v23, 0.0  ;;  %v2594_v54 = vsel %vm655_vm1, %v5705_v49, 0.0  ;;  %v2627_v2 = vmul.f32 %v5702_v23, %v5693_v43  ;;  %v2628_v38 = vmul.f32 %v5705_v49, %v5693_v43 }
 0x9eb   : > { %v2397_v29 = vpop.permute.xlu1 %2396  ;;  %2592 = vadd.xlane.f32.xlu0 %v2591_v17  ;;  %2595 = vadd.xlane.f32.xlu1 %v2594_v54  ;;  %v2401_v3 = vpop.permute.xlu0 %2400 }
 0x9ec   : > { %vm2533_vm2 = vcmp.ge.f32.partialorder %v5708_v30, %v2397_v29  ;;  %vm2534_vm3 = vcmp.ge.f32.partialorder %v5708_v30, %v2401_v3  ;;  %v2655_v39 = vsel %vm655_vm1, %v2627_v2, 0.0  ;;  %v2658_v63 = vsel %vm655_vm1, %v2628_v38, 0.0 }
 0x9ed   : > { %v3862_v14 = vsel %vm2533_vm2, 1.0, %v4735_v1  ;;  %v3863_v48 = vsel %vm2534_vm3, 1.0, %v4735_v1 }
 0x9ee   : > { %v2597_v47 = vsel %vm655_vm1, %v3862_v14, 0.0  ;;  %v2600_v50 = vsel %vm655_vm1, %v3863_v48, 0.0  ;;  %v2629_v33 = vmul.f32 %v3862_v14, %v5708_v30  ;;  %v2630_v41 = vmul.f32 %v3863_v48, %v5708_v30 }
 0x9ef   : > { %v2408_v25 = vpop.permute.xlu1 %2407  ;;  %2598 = vadd.xlane.f32.xlu0 %v2597_v47  ;;  %2601 = vadd.xlane.f32.xlu1 %v2600_v50  ;;  %v2412_v28 = vpop.permute.xlu0 %2411 }
 0x9f0   : > { %vm2535_vm4 = vcmp.ge.f32.partialorder %v5720_v35, %v2408_v25  ;;  %vm2536_vm5 = vcmp.ge.f32.partialorder %v5720_v35, %v2412_v28  ;;  %v2661_v42 = vsel %vm655_vm1, %v2629_v33, 0.0  ;;  %v2664_v23 = vsel %vm655_vm1, %v2630_v41, 0.0 }
 0x9f1   : > { %v3864_v11 = vsel %vm2535_vm4, 1.0, %v4735_v1  ;;  %v3865_v5 = vsel %vm2536_vm5, 1.0, %v4735_v1 }
 0x9f2   : > { %v2603_v60 = vsel %vm655_vm1, %v3864_v11, 0.0  ;;  %v2606_v4 = vsel %vm655_vm1, %v3865_v5, 0.0  ;;  %v2631_v21 = vmul.f32 %v3864_v11, %v5720_v35  ;;  %v2632_v43 = vmul.f32 %v3865_v5, %v5720_v35 }
 0x9f3   : > { %v2419_v8 = vpop.permute.xlu1 %2418  ;;  %2604 = vadd.xlane.f32.xlu0 %v2603_v60  ;;  %2607 = vadd.xlane.f32.xlu1 %v2606_v4  ;;  %v2423_v10 = vpop.permute.xlu0 %2422 }
 0x9f4   : > { %vm2537_vm14 = vcmp.ge.f32.partialorder %v2512_v31, %v2419_v8  ;;  %vm2538_vm15 = vcmp.ge.f32.partialorder %v2512_v31, %v2423_v10  ;;  %v2667_v30 = vsel %vm655_vm1, %v2631_v21, 0.0  ;;  %v2670_v54 = vsel %vm655_vm1, %v2632_v43, 0.0 }
 0x9f5   : > { %v3866_v15 = vsel %vm2537_vm14, 1.0, %v4735_v1  ;;  %v3867_v26 = vsel %vm2538_vm15, 1.0, %v4735_v1 }
 0x9f6   : > { %v2609_v52 = vsel %vm655_vm1, %v3866_v15, 0.0  ;;  %v2612_v44 = vsel %vm655_vm1, %v3867_v26, 0.0  ;;  %v2633_v49 = vmul.f32 %v3866_v15, %v2512_v31  ;;  %v2634_v17 = vmul.f32 %v3867_v26, %v2512_v31 }
 0x9f7   : > { %v2430_v45 = vpop.permute.xlu1 %2429  ;;  %2610 = vadd.xlane.f32.xlu0 %v2609_v52  ;;  %2613 = vadd.xlane.f32.xlu1 %v2612_v44  ;;  %v2434_v36 = vpop.permute.xlu0 %2433 }
 0x9f8   : > { %vm2539_vm2 = vcmp.ge.f32.partialorder %v2516_v32, %v2430_v45  ;;  %vm2540_vm3 = vcmp.ge.f32.partialorder %v2516_v32, %v2434_v36  ;;  %v2673_v3 = vsel %vm655_vm1, %v2633_v49, 0.0  ;;  %v2676_v14 = vsel %vm655_vm1, %v2634_v17, 0.0 }
 0x9f9   : > { %v3868_v19 = vsel %vm2539_vm2, 1.0, %v4735_v1  ;;  %v3869_v24 = vsel %vm2540_vm3, 1.0, %v4735_v1 }
 0x9fa   : > { %v2615_v61 = vsel %vm655_vm1, %v3868_v19, 0.0  ;;  %v2618_v40 = vsel %vm655_vm1, %v3869_v24, 0.0  ;;  %v2635_v46 = vmul.f32 %v3868_v19, %v2516_v32  ;;  %v2636_v29 = vmul.f32 %v3869_v24, %v2516_v32 }
 0x9fb   : > { %2616 = vadd.xlane.f32.xlu0 %v2615_v61  ;;  %2619 = vadd.xlane.f32.xlu1 %v2618_v40  ;;  %v5778_v47 = vpop.permute.xlu1 %2694  ;;  %v5780_v50 = vpop.permute.xlu0 %2690 }
 0x9fc   : > { %v2679_v48 = vsel %vm655_vm1, %v2635_v46, 0.0  ;;  %v2682_v35 = vsel %vm655_vm1, %v2636_v29, 0.0 }
 0x9ff   : > { %2638 = vadd.xlane.f32.xlu0 %v2637_v34  ;;  %2641 = vadd.xlane.f32.xlu1 %v2640_v22  ;;  %v5782_v20 = vpop.permute.xlu1 %2701  ;;  %v5784_v25 = vpop.permute.xlu0 %2705 }
 0xa03   : > { %2644 = vadd.xlane.f32.xlu0 %v2643_v62  ;;  %2647 = vadd.xlane.f32.xlu1 %v2646_v37  ;;  %v5786_v28 = vpop.permute.xlu1 %2712  ;;  %v5788_v11 = vpop.permute.xlu0 %2716 }
 0xa07   : > { %2650 = vadd.xlane.f32.xlu0 %v2649_v18  ;;  %2653 = vadd.xlane.f32.xlu1 %v2652_v16  ;;  %v5790_v5 = vpop.permute.xlu1 %2723  ;;  %v5792_v31 = vpop.permute.xlu0 %2727 }
 0xa0b   : > { %2656 = vadd.xlane.f32.xlu0 %v2655_v39  ;;  %2659 = vadd.xlane.f32.xlu1 %v2658_v63  ;;  %v5794_v60 = vpop.permute.xlu1 %2734  ;;  %v5796_v4 = vpop.permute.xlu0 %2738 }
 0xa0f   : > { %2662 = vadd.xlane.f32.xlu0 %v2661_v42  ;;  %2665 = vadd.xlane.f32.xlu1 %v2664_v23  ;;  %v5800_v53 = vpop.permute.xlu0 %2749 }
 0xa13   : > { %2668 = vadd.xlane.f32.xlu0 %v2667_v30  ;;  %2671 = vadd.xlane.f32.xlu1 %v2670_v54  ;;  %v5804_v10 = vpop.permute.xlu0 %2760 }
 0xa17   : > { %2674 = vadd.xlane.f32.xlu0 %v2673_v3  ;;  %2677 = vadd.xlane.f32.xlu1 %v2676_v14 }
 0xa1b   : > { %2680 = vadd.xlane.f32.xlu0 %v2679_v48  ;;  %2683 = vadd.xlane.f32.xlu1 %v2682_v35 }
 0xa2c   : > { %2767 = vbcast.lane.b32.xlu1 %v5639_v6, 256 }
 0xa31   : > { %2771 = vbcast.lane.b32.xlu0 %v5639_v6, 264  ;;  %v5798_v6 = vpop.permute.xlu1 %2745 }
 0xa35   : > { %v5802_v8 = vpop.permute.xlu1 %2756 }
 0xa6c   : > { %v2575_v15 = vpop.xlane.xlu1 %2574  ;;  %v2578_v26 = vpop.xlane.xlu0 %2577 }
 0xa6d   : > { %v2789_v56 = vmul.f32 %v5780_v50, %v2575_v15  ;;  %v2790_v34 = vmul.f32 %v5778_v47, %v2578_v26 }
 0xa6f   : > { %v2805_v62 = vadd.f32 1.0, %v2789_v56  ;;  %v2806_v37 = vadd.f32 1.0, %v2790_v34 }
 0xa70   : > { %v2584_v32 = vpop.xlane.xlu1 %2583  ;;  %v2581_v52 = vpop.xlane.xlu0 %2580 }
 0xa71   : > { %v2792_v51 = vmul.f32 %v5784_v25, %v2584_v32  ;;  %v2791_v2 = vmul.f32 %v5782_v20, %v2581_v52 }
 0xa73   : > { %v2808_v16 = vadd.f32 1.0, %v2792_v51  ;;  %v2807_v39 = vadd.f32 1.0, %v2791_v2 }
 0xa74   : > { %v2590_v44 = vpop.xlane.xlu1 %2589  ;;  %v2587_v45 = vpop.xlane.xlu0 %2586 }
 0xa75   : > { %v2794_v63 = vmul.f32 %v5788_v11, %v2590_v44  ;;  %v2793_v21 = vmul.f32 %v5786_v28, %v2587_v45 }
 0xa77   : > { %v2810_v54 = vadd.f32 1.0, %v2794_v63  ;;  %v2809_v46 = vadd.f32 1.0, %v2793_v21 }
 0xa78   : > { %v2596_v36 = vpop.xlane.xlu1 %2595  ;;  %v2593_v19 = vpop.xlane.xlu0 %2592 }
 0xa79   : > { %v2796_v49 = vmul.f32 %v5792_v31, %v2596_v36  ;;  %v2795_v29 = vmul.f32 %v5790_v5, %v2593_v19 }
 0xa7b   : > { %v2812_v35 = vadd.f32 1.0, %v2796_v49  ;;  %v2811_v32 = vadd.f32 1.0, %v2795_v29 }
 0xa7c   : > { %v2602_v24 = vpop.xlane.xlu1 %2601  ;;  %v2599_v58 = vpop.xlane.xlu0 %2598 }
 0xa7d   : > { %v2798_v52 = vmul.f32 %v5796_v4, %v2602_v24  ;;  %v2797_v44 = vmul.f32 %v5794_v60, %v2599_v58 }
 0xa80   : > { %v2608_v59 = vpop.xlane.xlu1 %2607  ;;  %v2605_v61 = vpop.xlane.xlu0 %2604 }
 0xa81   : > { %v2800_v56 = vmul.f32 %v5800_v53, %v2608_v59  ;;  %v2799_v24 = vmul.f32 %v5798_v6, %v2605_v61 }
 0xa84   : > { %v5806_v40 = vpop.xlane.xlu1 %2613  ;;  %v5808_v7 = vpop.xlane.xlu0 %2610 }
 0xa85   : > { %v2802_v63 = vmul.f32 %v5804_v10, %v5806_v40  ;;  %v2801_v21 = vmul.f32 %v5802_v8, %v5808_v7 }
 0xa88   : > { %v5812_v22 = vpop.xlane.xlu1 %2619  ;;  %v5814_v13 = vpop.xlane.xlu0 %2616 }
 0xa8c   : > { %v2642_v38 = vpop.xlane.xlu1 %2641  ;;  %v2639_v18 = vpop.xlane.xlu0 %2638 }
 0xa8d   : > { %vm2822_vm4 = vcmp.gt.f32.partialorder %v2806_v37, %v2642_v38  ;;  %vm2821_vm5 = vcmp.gt.f32.partialorder %v2805_v62, %v2639_v18  ;;  %v2814_v62 = vadd.f32 1.0, %v2798_v52  ;;  %v2813_v37 = vadd.f32 1.0, %v2797_v44 }
 0xa8e   : > { %v5819_v33 = vsel %vm2822_vm4, 1.0, %v4735_v1  ;;  %v5822_v41 = vsel %vm2821_vm5, 1.0, %v4735_v1  ;;  %v2816_v18 = vadd.f32 1.0, %v2800_v56 }
 0xa8f   : > { %v4284_v43 = vpack.i.bf16 %v5819_v33, %v5822_v41  ;;  %v2869_v52 = vmul.f32 %v5822_v41, %v5780_v50 }
 0xa90   : > { %v2648_v42 = vpop.xlane.xlu1 %2647  ;;  %v2645_v23 = vpop.xlane.xlu0 %2644 }
 0xa91   : > { %vm2824_vm14 = vcmp.gt.f32.partialorder %v2808_v16, %v2648_v42  ;;  %vm2823_vm15 = vcmp.gt.f32.partialorder %v2807_v39, %v2645_v23  ;;  %4285 = vperm.xlu1 %4248, %v4284_v43   ;;  %v2815_v39 = vadd.f32 1.0, %v2799_v24 }
 0xa92   : > { %v5830_v17 = vsel %vm2824_vm14, 1.0, %v4735_v1  ;;  %v5833_v30 = vsel %vm2823_vm15, 1.0, %v4735_v1 }
 0xa93   : > { %v4289_v3 = vpack.i.bf16 %v5830_v17, %v5833_v30  ;;  %v2871_v56 = vmul.f32 %v5833_v30, %v5782_v20 }
 0xa94   : > { %v2654_v14 = vpop.xlane.xlu1 %2653  ;;  %v2651_v48 = vpop.xlane.xlu0 %2650 }
 0xa95   : > { %vm2826_vm2 = vcmp.gt.f32.partialorder %v2810_v54, %v2654_v14  ;;  %vm2825_vm3 = vcmp.gt.f32.partialorder %v2809_v46, %v2651_v48  ;;  %4290 = vperm.xlu0 %4242, %v4289_v3   ;;  %v2818_v54 = vadd.f32 1.0, %v2802_v63  ;;  %v2817_v46 = vadd.f32 1.0, %v2801_v21 }
 0xa96   : > { %v5839_v15 = vsel %vm2826_vm2, 1.0, %v4735_v1  ;;  %v5842_v26 = vsel %vm2825_vm3, 1.0, %v4735_v1 }
 0xa97   : > { %v4294_v45 = vpack.i.bf16 %v5839_v15, %v5842_v26  ;;  %v2873_v50 = vmul.f32 %v5842_v26, %v5786_v28  ;;  %v2874_v28 = vmul.f32 %v5839_v15, %v5788_v11 }
 0xa98   : > { %v2660_v36 = vpop.xlane.xlu1 %2659  ;;  %v2657_v19 = vpop.xlane.xlu0 %2656 }
 0xa99   : > { %vm2828_vm4 = vcmp.gt.f32.partialorder %v2812_v35, %v2660_v36  ;;  %vm2827_vm5 = vcmp.gt.f32.partialorder %v2811_v32, %v2657_v19  ;;  %4295 = vperm.xlu1 %4248, %v4294_v45  }
 0xa9a   : > { %v5850_v34 = vsel %vm2828_vm4, 1.0, %v4735_v1  ;;  %v3876_v51 = vsel %vm2827_vm5, 1.0, %v4735_v1 }
 0xa9b   : > { %v4299_v58 = vpack.i.bf16 %v5850_v34, %v3876_v51  ;;  %v2875_v20 = vmul.f32 %v3876_v51, %v5790_v5 }
 0xa9c   : > { %v2666_v2 = vpop.xlane.xlu1 %2665  ;;  %v2663_v38 = vpop.xlane.xlu0 %2662 }
 0xa9d   : > { %vm2830_vm14 = vcmp.gt.f32.partialorder %v2814_v62, %v2666_v2  ;;  %vm2829_vm15 = vcmp.gt.f32.partialorder %v2813_v37, %v2663_v38  ;;  %4300 = vperm.xlu0 %4242, %v4299_v58  }
 0xa9e   : > { %v3879_v16 = vsel %vm2830_vm14, 1.0, %v4735_v1  ;;  %v3878_v59 = vsel %vm2829_vm15, 1.0, %v4735_v1 }
 0xa9f   : > { %v4304_v61 = vpack.i.bf16 %v3879_v16, %v3878_v59  ;;  %v2877_v30 = vmul.f32 %v3878_v59, %v5794_v60 }
 0xaa0   : > { %v2672_v43 = vpop.xlane.xlu1 %2671  ;;  %v2669_v42 = vpop.xlane.xlu0 %2668 }
 0xaa1   : > { %vm2832_vm2 = vcmp.gt.f32.partialorder %v2816_v18, %v2672_v43  ;;  %vm2831_vm3 = vcmp.gt.f32.partialorder %v2815_v39, %v2669_v42  ;;  %4305 = vperm.xlu1 %4248, %v4304_v61  }
 0xaa2   : > { %v3881_v23 = vsel %vm2832_vm2, 1.0, %v4735_v1  ;;  %v3880_v49 = vsel %vm2831_vm3, 1.0, %v4735_v1 }
 0xaa3   : > { %v4309_v29 = vpack.i.bf16 %v3881_v23, %v3880_v49  ;;  %v2879_v26 = vmul.f32 %v3880_v49, %v5798_v6  ;;  %v2880_v60 = vmul.f32 %v3881_v23, %v5800_v53 }
 0xaa4   : > { %v2678_v3 = vpop.xlane.xlu1 %2677  ;;  %v2675_v14 = vpop.xlane.xlu0 %2674 }
 0xaa5   : > { %vm2834_vm4 = vcmp.gt.f32.partialorder %v2818_v54, %v2678_v3  ;;  %vm2833_vm5 = vcmp.gt.f32.partialorder %v2817_v46, %v2675_v14  ;;  %4310 = vperm.xlu0 %4242, %v4309_v29  }
 0xaa6   : > { %v3883_v40 = vsel %vm2834_vm4, 1.0, %v4735_v1  ;;  %v3882_v7 = vsel %vm2833_vm5, 1.0, %v4735_v1 }
 0xaa7   : > { %v4314_v48 = vpack.i.bf16 %v3883_v40, %v3882_v7  ;;  %v2881_v5 = vmul.f32 %v3882_v7, %v5802_v8  ;;  %v2882_v11 = vmul.f32 %v3883_v40, %v5804_v10 }
 0xaa8   : > { %v2684_v35 = vpop.xlane.xlu1 %2683  ;;  %v2681_v32 = vpop.xlane.xlu0 %2680 }
 0xaa9   : > { %4315 = vperm.xlu1 %4248, %v4314_v48  }
 0xaac   : > { %v2768_v44 = vpop.permute.xlu1 %2767  ;;  %v2772_v45 = vpop.permute.xlu0 %2771 }
 0xaad   : > { %v2803_v36 = vmul.f32 %v2768_v44, %v5814_v13  ;;  %v2804_v19 = vmul.f32 %v2772_v45, %v5812_v22  ;;  %2902 = vperm.xlu1 %4248, %v2869_v52   ;;  %v2870_v22 = vmul.f32 %v5819_v33, %v5778_v47  ;;  %v2872_v13 = vmul.f32 %v5830_v17, %v5784_v25 }
 0xaae   : > { %v2876_v47 = vmul.f32 %v5850_v34, %v5792_v31  ;;  %v2878_v25 = vmul.f32 %v3879_v16, %v5796_v4 }
 0xaaf   : > { %v2819_v62 = vadd.f32 1.0, %v2803_v36  ;;  %v2820_v37 = vadd.f32 1.0, %v2804_v19 }
 0xab1   : > { %vm2835_vm14 = vcmp.gt.f32.partialorder %v2819_v62, %v2681_v32  ;;  %vm2836_vm15 = vcmp.gt.f32.partialorder %v2820_v37, %v2684_v35  ;;  %2908 = vperm.xlu1 %4248, %v2871_v56  }
 0xab2   : > { %v3884_v24 = vsel %vm2835_vm14, 1.0, %v4735_v1  ;;  %v3885_v58 = vsel %vm2836_vm15, 1.0, %v4735_v1 }
 0xab3   : > { %v4319_v41 = vpack.i.bf16 %v3885_v58, %v3884_v24  ;;  %v2883_v33 = vmul.f32 %v3884_v24, %v2768_v44  ;;  %v2884_v6 = vmul.f32 %v3885_v58, %v2772_v45 }
 0xab5   : > { %2914 = vperm.xlu1 %4248, %v2873_v50   ;;  %4320 = vperm.xlu0 %4242, %v4319_v41  }
 0xab9   : > { %2920 = vperm.xlu1 %4248, %v2875_v20   ;;  %2905 = vperm.xlu0 %4242, %v2870_v22  }
 0xabd   : > { %2926 = vperm.xlu1 %4248, %v2877_v30   ;;  %2911 = vperm.xlu0 %4242, %v2872_v13  }
 0xac1   : > { %2932 = vperm.xlu1 %4248, %v2879_v26   ;;  %2917 = vperm.xlu0 %4242, %v2874_v28  }
 0xac5   : > { %2938 = vperm.xlu1 %4248, %v2881_v5   ;;  %2923 = vperm.xlu0 %4242, %v2876_v47  }
 0xac9   : > { %2944 = vperm.xlu1 %4248, %v2883_v33   ;;  %2929 = vperm.xlu0 %4242, %v2878_v25  }
 0xacd   : > { %2935 = vperm.xlu0 %4242, %v2880_v60  }
 0xad1   : > { %2941 = vperm.xlu0 %4242, %v2882_v11  }
 0xad5   : > { %2947 = vperm.xlu0 %4242, %v2884_v6  }
 0xb10   : > { %v4286_v17 = vpop.permute.xlu1 %4285 }
 0xb11   : > { %v4288_v59 = vunpack.i.h.bf16 %v4286_v17  ;;  %v4287_v39 = vunpack.i.l.bf16 %v4286_v17 }
 0xb13   : > { %v3103_v14 = vrot.slane %v4288_v59, %v5205_v57  ;;  %v3099_v40 = vrot.slane %v4287_v39, %v5202_v55 }
 0xb14   : > { %v4291_v31 = vpop.permute.xlu0 %4290 }
 0xb15   : > { %v4293_v2 = vunpack.i.h.bf16 %v4291_v31  ;;  %v4292_v38 = vunpack.i.l.bf16 %v4291_v31  ;;  %v3104_v37 = vsel %vm1677_vm6, %v3103_v14, %v3099_v40 }
 0xb17   : > { %v3112_v43 = vrot.slane %v4293_v2, %v5205_v57  ;;  %v3108_v42 = vrot.slane %v4292_v38, %v5202_v55 }
 0xb18   : > { %v4296_v15 = vpop.permute.xlu1 %4295 }
 0xb19   : > { %v4298_v4 = vunpack.i.h.bf16 %v4296_v15  ;;  %v4297_v18 = vunpack.i.l.bf16 %v4296_v15  ;;  %v3113_v44 = vsel %vm1677_vm6, %v3112_v43, %v3108_v42 }
 0xb1a   : > { %v3168_v58 = vsel %vm1742_vm7, %v3113_v44, %v3104_v37 }
 0xb1b   : > { %v3121_v54 = vrot.slane %v4298_v4, %v5205_v57  ;;  %v3117_v46 = vrot.slane %v4297_v18, %v5202_v55 }
 0xb1c   : > { %v4301_v8 = vpop.permute.xlu0 %4300 }
 0xb1d   : > { %v4303_v53 = vunpack.i.h.bf16 %v4301_v8  ;;  %v4302_v63 = vunpack.i.l.bf16 %v4301_v8  ;;  %v3122_v19 = vsel %vm1677_vm6, %v3121_v54, %v3117_v46 }
 0xb1e   : > { %v3169_v20 = vsel %vm1744_vm8, %v3122_v19, %v3168_v58 }
 0xb1f   : > { %v3130_v7 = vrot.slane %v4303_v53, %v5205_v57  ;;  %v3126_v48 = vrot.slane %v4302_v63, %v5202_v55 }
 0xb20   : > { %v4306_v34 = vpop.permute.xlu1 %4305 }
 0xb21   : > { %v4308_v21 = vunpack.i.h.bf16 %v4306_v34  ;;  %v4307_v10 = vunpack.i.l.bf16 %v4306_v34  ;;  %v3131_v24 = vsel %vm1677_vm6, %v3130_v7, %v3126_v48 }
 0xb22   : > { %v3170_v26 = vsel %vm1746_vm9, %v3131_v24, %v3169_v20 }
 0xb23   : > { %v3139_v35 = vrot.slane %v4308_v21, %v5205_v57  ;;  %v3135_v32 = vrot.slane %v4307_v10, %v5202_v55 }
 0xb24   : > { %v4311_v16 = vpop.permute.xlu0 %4310 }
 0xb25   : > { %v4313_v23 = vunpack.i.h.bf16 %v4311_v16  ;;  %v4312_v49 = vunpack.i.l.bf16 %v4311_v16  ;;  %v3140_v50 = vsel %vm1677_vm6, %v3139_v35, %v3135_v32 }
 0xb26   : > { %v3171_v33 = vsel %vm1748_vm10, %v3140_v50, %v3170_v26  ;;  %v3186_v26 = vld [vmem:[#allocation6 + $0x20] sm:$0xff] }
 0xb27   : > { %v3148_v45 = vrot.slane %v4313_v23, %v5205_v57  ;;  %v3144_v36 = vrot.slane %v4312_v49, %v5202_v55 }
 0xb28   : > { %v4316_v51 = vpop.permute.xlu1 %4315 }
 0xb29   : > { %v4318_v29 = vunpack.i.h.bf16 %v4316_v51  ;;  %v4317_v3 = vunpack.i.l.bf16 %v4316_v51  ;;  %v3149_v13 = vsel %vm1677_vm6, %v3148_v45, %v3144_v36 }
 0xb2a   : > { %v3172_v11 = vsel %vm1750_vm11, %v3149_v13, %v3171_v33 }
 0xb2b   : > { %v3157_v56 = vrot.slane %v4318_v29, %v5205_v57  ;;  %v3153_v62 = vrot.slane %v4317_v3, %v5202_v55 }
 0xb2c   : > { %v5890_v61 = vpop.permute.xlu1 %2902 }
 0xb2d   : > { %v3158_v47 = vsel %vm1677_vm6, %v3157_v56, %v3153_v62  ;;  %v2952_v23 = vrot.slane %v5890_v61, %v5202_v55 }
 0xb2e   : > { %v3173_v17 = vsel %vm1752_vm12, %v3158_v47, %v3172_v11 }
 0xb30   : > { %v2909_v52 = vpop.permute.xlu1 %2908 }
 0xb31   : > { %v2961_v63 = vrot.slane %v2909_v52, %v5202_v55 }
 0xb34   : > { %v2915_v41 = vpop.permute.xlu1 %2914  ;;  %v4321_v22 = vpop.permute.xlu0 %4320 }
 0xb35   : > { %v4323_v30 = vunpack.i.h.bf16 %v4321_v22  ;;  %v4322_v28 = vunpack.i.l.bf16 %v4321_v22  ;;  %v2970_v43 = vrot.slane %v2915_v41, %v5202_v55 }
 0xb37   : > { %v3166_v5 = vrot.slane %v4323_v30, %v5205_v57  ;;  %v3162_v25 = vrot.slane %v4322_v28, %v5202_v55  ;;  %v3189_v30 = vld [vmem:[#allocation7 + $0x20] sm:$0xff]  ;;  %v3190_v28 = vld [vmem:[#allocation7 + $0x28] sm:$0xff] }
 0xb38   : > { %v2906_v60 = vpop.permute.xlu0 %2905  ;;  %v2921_v15 = vpop.permute.xlu1 %2920  ;;  %v4082_v47 = vpack.c.bf16 %v3190_v28, %v3189_v30 }
 0xb39   : > { %v3167_v6 = vsel %vm1677_vm6, %v3166_v5, %v3162_v25  ;;  %v2956_v21 = vrot.slane %v2906_v60, %v5205_v57  ;;  %v2979_v49 = vrot.slane %v2921_v15, %v5202_v55 }
 0xb3a   : > { %v3174_v31 = vsel %vm1754_vm13, %v3167_v6, %v3173_v17  ;;  %4083 = vmatpush3.bf16.msra.mxu1 %v4082_v47 }
 0xb3b   : > { %v3176_v34 = vsel %vm655_vm1, %v3174_v31, 0.0  ;;  %v2957_v40 = vsel %vm1677_vm6, %v2956_v21, %v2952_v23  ;;  %4087 = vmatprep.subr.bf16.mxu1 %v4733_v0  ;;  %v3361_v31 = vld [vmem:[#allocation13 + $0x20] sm:$0xff] }
 0xb3c   : > { %v2912_v8 = vpop.permute.xlu0 %2911  ;;  %3177 = vadd.xlane.f32.xlu1 %v3176_v34  ;;  %v2927_v51 = vpop.permute.xlu1 %2926  ;;  %v3362_v34 = vld [vmem:[#allocation13 + $0x28] sm:$0xff] }
 0xb3d   : > { %v2965_v16 = vrot.slane %v2912_v8, %v5205_v57  ;;  %v2988_v29 = vrot.slane %v2927_v51, %v5202_v55  ;;  %v3358_v8 = vld [vmem:[#allocation12 + $0x20] sm:$0xff]  ;;  %v4088_v51 = vpack.c.bf16 %v3362_v34, %v3361_v31 }
 0xb3f   : > { %v2966_v54 = vsel %vm1677_vm6, %v2965_v16, %v2961_v63 }
 0xb40   : > { %v2918_v2 = vpop.permute.xlu0 %2917  ;;  %v2933_v4 = vpop.permute.xlu1 %2932  ;;  %v3021_v61 = vsel %vm1742_vm7, %v2966_v54, %v2957_v40 }
 0xb41   : > { %v2974_v59 = vrot.slane %v2918_v2, %v5205_v57  ;;  %v2997_v7 = vrot.slane %v2933_v4, %v5202_v55  ;;  %v3359_v2 = vld [vmem:[#allocation12 + $0x28] sm:$0xff] }
 0xb43   : > { %v2975_v3 = vsel %vm1677_vm6, %v2974_v59, %v2970_v43 }
 0xb44   : > { %v2924_v38 = vpop.permute.xlu0 %2923  ;;  %v2939_v39 = vpop.permute.xlu1 %2938  ;;  %v3022_v45 = vsel %vm1744_vm8, %v2975_v3, %v3021_v61 }
 0xb45   : > { %v2983_v10 = vrot.slane %v2924_v38, %v5205_v57  ;;  %v3006_v32 = vrot.slane %v2939_v39, %v5202_v55  ;;  %v4085_v38 = vpack.c.bf16 %v3359_v2, %v3358_v8 }
 0xb47   : > { %v2984_v48 = vsel %vm1677_vm6, %v2983_v10, %v2979_v49  ;;  %v3887_v10 = vld [vmem:[#allocation9 + $0x2] ss:$0 sm:$0xff]  ;;  %v3534_v49 = vld [vmem:[%s6058_s20 + $0x8] sm:$0xff] }
 0xb48   : > { %v2930_v18 = vpop.permute.xlu0 %2929  ;;  %v2945_v52 = vpop.permute.xlu1 %2944  ;;  %v3023_v19 = vsel %vm1746_vm9, %v2984_v48, %v3022_v45 }
 0xb49   : > { %v2992_v42 = vrot.slane %v2930_v18, %v5205_v57  ;;  %v3015_v37 = vrot.slane %v2945_v52, %v5202_v55  ;;  %v3187_v55 = vld [vmem:[#allocation6 + $0x28] sm:$0xff] }
 0xb4a   : > { %v4079_v5 = vpack.c.bf16 %v3187_v55, %v3186_v26 }
 0xb4b   : > { %v2993_v44 = vsel %vm1677_vm6, %v2992_v42, %v2988_v29 }
 0xb4c   : > { %v2936_v53 = vpop.permute.xlu0 %2935  ;;  %v3024_v24 = vsel %vm1748_vm10, %v2993_v44, %v3023_v19  ;;  %4080 = vmatpush3.bf16.msra.mxu0 %v4079_v5 }
 0xb4d   : > { %v3001_v46 = vrot.slane %v2936_v53, %v5205_v57  ;;  %4084 = vmatprep.subr.bf16.mxu0 %v4733_v0 }
 0xb4f   : > { %v3002_v36 = vsel %vm1677_vm6, %v3001_v46, %v2997_v7  ;;  %v3893_v46 = vld [vmem:[#allocation16 + $0x2] ss:$0 sm:$0xff] }
 0xb50   : > { %v2942_v14 = vpop.permute.xlu0 %2941  ;;  %v3025_v50 = vsel %vm1750_vm11, %v3002_v36, %v3024_v24 }
 0xb51   : > { %v3010_v35 = vrot.slane %v2942_v14, %v5205_v57 }
 0xb53   : > { %v3011_v56 = vsel %vm1677_vm6, %v3010_v35, %v3006_v32  ;;  %v3891_v32 = vld [vmem:[#allocation15 + $0x2] ss:$0 sm:$0xff] }
 0xb54   : > { %v2948_v62 = vpop.permute.xlu0 %2947  ;;  %v3026_v22 = vsel %vm1752_vm12, %v3011_v56, %v3025_v50  ;;  %v2260_v56 = vmax.f32 %v5607_v27, 0.0 }
 0xb55   : > { %v3019_v58 = vrot.slane %v2948_v62, %v5205_v57 }
 0xb57   : > { %v3020_v41 = vsel %vm1677_vm6, %v3019_v58, %v3015_v37 }
 0xb58   : > { %v3027_v20 = vsel %vm1754_vm13, %v3020_v41, %v3026_v22 }
 0xb59   : > { %v3029_v13 = vsel %vm655_vm1, %v3027_v20, 0.0 }
 0xb5a   : > { %3030 = vadd.xlane.f32.xlu0 %v3029_v13 }
 0xbc9   : > { %v3178_v57 = vpop.xlane.xlu1 %3177 }
 0xbca   : > { %4342 = vrcp.f32 %v3178_v57 }
 0xbd4   : > { %v4343_v60 = vpop.eup %4342 }
 0xbe7   : > { %v3031_v25 = vpop.xlane.xlu0 %3030 }
 0xbe8   : > { %v3886_v33 = vadd.f32 -1.0, %v3031_v25 }
 0xbea   : > { %v3181_v11 = vmul.f32 %v4343_v60, %v3886_v33 }
 0xbec   : > { %v3182_v6 = vsub.f32 %v5614_v9, %v3181_v11 }
 0xbee   : > { %v3183_v17 = vmax.f32 %v3182_v6, 0.0 }
 0xbf0   : > { %v3184_v15 = vmul.f32 %v3183_v17, %v5169_v12  ;;  %v3889_v12 = vld [vmem:[#allocation10 + $0x2] ss:$0 sm:$0xff] }
 0xbf2   : > { %4018 = vmatmul.mubr.msk.f32.vlgmr.msra.gmra.mrb[10].mxu0 %vm655_vm1, %v3184_v15  ;;  %4025 = vmatmul.mubr.msk.f32.vlgmr.msra.gmra.mrb[10].mxu1 %vm655_vm1, %v3184_v15 }
 0xbf3   : > { %4031 = vmatprep.mubr.msk.f32.mxu0 %vm4734_vm0, %v4735_v1  ;;  %4038 = vmatprep.mubr.msk.f32.mxu1 %vm4734_vm0, %v4735_v1 }
 0xbf4   : > { %4089 = vmatpush3.bf16.msra.mxu1 %v4088_v51  ;;  %4086 = vmatpush3.bf16.msra.mxu0 %v4085_v38 }
 0xbf5   : > { %4090 = vmatprep.subr.bf16.mxu0 %v4733_v0  ;;  %v3533_v0 = vld [vmem:[%s6058_s20] sm:$0xff] }
 0xbf6   : > { %v4091_v54 = vpack.c.bf16 %v3534_v49, %v3533_v0 }
 0xcc5   : > { %v3270_v9 = vpop.f32.mrb[10].mxu0  ;;  %v3346_v4 = vpop.f32.mrb[10].mxu1 }
 0xcc6   : > { %v3347_v18 = vadd.f32 %v3889_v12, %v3346_v4  ;;  %v4019_v16 = vpop.f32.mrb[11].mxu0  ;;  %v4026_v59 = vpop.f32.mrb[11].mxu1  ;;  %v3271_v43 = vadd.f32 %v3887_v10, %v3270_v9 }
 0xcc8   : > { %v3350_v39 = vsub.f32 0.0, %v3347_v18 }
 0xcca   : > { %v3351_v53 = vmul.f32 1.442695, %v3350_v39 }
 0xccc   : > { %4344 = vpow2.f32 %v3351_v53 }
 0xcd6   : > { %v4345_v63 = vpop.eup %4344 }
 0xcd7   : > { %v3353_v21 = vadd.f32 1.0, %v4345_v63 }
 0xcd9   : > { %4346 = vrcp.f32 %v3353_v21 }
 0xce3   : > { %v4347_v42 = vpop.eup %4346 }
 0xce4   : > { %v3356_v23 = vmul.f32 %v4347_v42, %v3271_v43 }
 0xce6   : > { %4032 = vmatmul.mubr.msk.f32.vlgmr.msra.gmra.mrb[12].mxu0 %vm655_vm1, %v3356_v23  ;;  %4039 = vmatmul.mubr.msk.f32.vlgmr.msra.gmra.mrb[12].mxu1 %vm655_vm1, %v3356_v23 }
 0xce7   : > { %4045 = vmatprep.mubr.msk.f32.mxu0 %vm4734_vm0, %v4735_v1  ;;  %4092 = vmatpush3.bf16.msra.mxu0 %v4091_v54 }
 0xdb9   : > { %v3442_v29 = vpop.f32.mrb[12].mxu0  ;;  %v3518_v3 = vpop.f32.mrb[12].mxu1 }
 0xdba   : > { %v3519_v14 = vadd.f32 %v3893_v46, %v3518_v3  ;;  %v4033_v40 = vpop.f32.mrb[13].mxu0  ;;  %v4040_v7 = vpop.f32.mrb[13].mxu1  ;;  %v3443_v52 = vadd.f32 %v3891_v32, %v3442_v29 }
 0xdbc   : > { %v3522_v48 = vsub.f32 0.0, %v3519_v14 }
 0xdbe   : > { %v3523_v35 = vmul.f32 1.442695, %v3522_v48 }
 0xdc0   : > { %4348 = vpow2.f32 %v3523_v35 }
 0xdca   : > { %v4349_v1 = vpop.eup %4348 }
 0xdcb   : > { %v3525_v61 = vadd.f32 1.0, %v4349_v1 }
 0xdcd   : > { %4350 = vrcp.f32 %v3525_v61 }
 0xdd7   : > { %v4351_v44 = vpop.eup %4350 }
 0xdd8   : > { %v3528_v45 = vmul.f32 %v4351_v44, %v3443_v52 }
 0xdda   : > { %v3529_v36 = vadd.f32 %v3528_v45, %v3356_v23 }
 0xddc   : > { %v3530_v19 = vmul.f32 0.70710677, %v3529_v36 }
 0xdde   : > { %v3531_v62 = vmax.f32 %v3530_v19, 0.0 }
 0xde0   : > { %v3532_v37 = vadd.f32 %v3531_v62, %v2260_v56 }
 0xde2   : > { %4046 = vmatmul.mubr.msk.f32.vlgmr.msra.gmra.mrb[14].mxu0 %vm655_vm1, %v3532_v37 }
 0xeb5   : > { %v3604_v24 = vpop.f32.mrb[14].mxu0 }
 0xeb6   : > { %3608 = vst [vmem:[%s625_s25] sm:$0xff] %v3604_v24  ;;  %v4047_v58 = vpop.f32.mrb[15].mxu0 }
 0xeb7 PF: > { %p29_p7 = scmp.ge.s32.totalorder %s5075_s23, 4   ;;  %s6060_s29 = smov %s4708_s30 }
 0xeb8   : > { %s6061_s30 = smov %s4712_s15  ;;  %s6062_s15 = smov %s5087_s11 }
 0xeb9   : > { %s6063_s16 = smov %s5075_s23  ;;  %31 = sbr.rel (!%p29_p7) target bundleno = 17 (0x11), region = 174 }
 0xec0   :  { %3628 = vsyncpa [#allocation3], 1 }
 0xec1   :  { %3630 = vsyncpa [#allocation3 + $0x1], 1 }
 0xec2   :  { %3631 = vsyncpa [#allocation5], 1 }
 0xec3   :  { %3632 = vsyncpa [#allocation8], 1 }
 0xec4   :  { %3633 = vsyncpa [#allocation11], 1 }
 0xec5   :  { %3634 = vsyncpa [#allocation14], 1 }
 0xec6   :  { %3635 = vsyncpa [#allocation17], 1 }

</bundles_post_ra>
